<compile_context>
chip_gen: v5e
topology: v5e:2x2
jax: 0.10.0
libtpu: 0.0.40
codegen_flags: <defaults>
</compile_context>

<pallas_src>
import jax
import jax.numpy as jnp
from jax.experimental import pallas as pl
from jax.experimental.pallas import tpu as pltpu

# ----------------------------- static config --------------------------------
B, L, D = 2, 8, 5            # batch, sequence length, amino-acid feature dim
C_OUT = 16                   # conv2d output channels
KH = 2                       # conv kernel height (width = 1)
H_CONV = L - KH + 1          # conv output height (stride 1, pad 0) = 7
PH, PW = H_CONV // 2, D // 2 # max_pool2d(2,2,0) output spatial dims = (3, 2)
N_FLAT = C_OUT * PH * PW     # flattened features into the last linear = 96
N_OUT = 2                    # final linear output
BN_EPS = 1e-5
NEG_INF = -1.0e9

# --------------------- packed-parameter buffer layout ------------------------
# One (P_ROWS, 128) f32 buffer; each block sits at a fixed row/col window.
ROW_WQKV = 0                     # D rows,     cols [0, 3D)   : [Q^T | K^T | V^T]
ROW_BQKV = ROW_WQKV + D          # 1 row,      cols [0, 3D)   : [Qb | Kb | Vb]
ROW_W1T = ROW_BQKV + 1           # D rows,     cols [0, D)    : W1^T
ROW_B1 = ROW_W1T + D             # 1 row,      cols [0, D)    : b1
ROW_WCONV = ROW_B1 + 1           # 2D rows,    cols [0, D*C)  : block-diag conv weight
ROW_CB = ROW_WCONV + 2 * D       # 1 row,      cols [0, D*C)  : conv bias tiled over W
ROW_GAMMA = ROW_CB + 1           # 1 row,      cols [0, C)    : bn gamma
ROW_BETA = ROW_GAMMA + 1         # 1 row,      cols [0, C)    : bn beta
ROW_W2 = ROW_BETA + 1            # N_OUT rows, cols [0, N_FLAT): final linear (perm'd)
ROW_B2 = ROW_W2 + N_OUT          # 1 row,      cols [0, N_OUT): b2
P_ROWS_USED = ROW_B2 + 1
P_ROWS = ((P_ROWS_USED + 7) // 8) * 8          # 32
P_COLS = 128


# ------------------------------- kernel -------------------------------------
def learner_kernel(x_ref, p_ref, out_ref):
    x = x_ref[...]                                   # [B, L, D] f32
    # rows whose |x| sums to zero are padding positions
    mask = jnp.sum(jnp.abs(x), axis=-1) == 0         # [B, L] bool

    # ---- self_attention: fused QKV projection (single MXU matmul) ----------
    xf = x.reshape(B * L, D)                                           # (16, 5)
    w_qkv = p_ref[ROW_WQKV:ROW_WQKV + D, :3 * D]                       # (D, 3D)
    b_qkv = p_ref[ROW_BQKV:ROW_BQKV + 1, :3 * D]                       # (1, 3D)
    qkv = jnp.dot(xf, w_qkv, preferred_element_type=jnp.float32) + b_qkv
    q = qkv[:, 0:D].reshape(B, L, D)
    k = qkv[:, D:2 * D].reshape(B, L, D)
    v = qkv[:, 2 * D:3 * D].reshape(B, L, D)

    # ---- attention scores + masked softmax (dim=-1) ------------------------
    score = jnp.einsum('bie,bje->bij', q, k,
                       preferred_element_type=jnp.float32)             # [B, L, L]
    mask2 = jnp.logical_or(mask[:, None, :], mask[:, :, None])
    score = jnp.where(mask2, NEG_INF, score)
    m = jnp.max(score, axis=-1, keepdims=True)
    e = jnp.exp(score - m)
    att = e / jnp.sum(e, axis=-1, keepdims=True)
    y = jnp.einsum('bij,bje->bie', att, v,
                   preferred_element_type=jnp.float32)                 # [B, L, D]
    y = jnp.where(mask[:, :, None], 0.0, y)      # zero masked query rows
    # torch.mean over the single attention head == identity

    # ---- linear (D -> D) + relu, flat over B*L ------------------------------
    yf = y.reshape(B * L, D)
    w1t = p_ref[ROW_W1T:ROW_W1T + D, :D]                               # (D, D)
    b1 = p_ref[ROW_B1:ROW_B1 + 1, :D]                                  # (1, D)
    yf = jnp.maximum(jnp.dot(yf, w1t, preferred_element_type=jnp.float32) + b1, 0.0)

    # ---- conv2d(16, 1, (2,1)), stride 1, pad 0, as ONE matmul ---------------
    # rows: (b, h) flattened; cols: fused (w, c) index w*C_OUT + c
    y3 = yf.reshape(B, L, D)
    ycat = jnp.concatenate([y3[:, :H_CONV, :], y3[:, 1:, :]], axis=-1)  # (B, H, 2D)
    ycf = ycat.reshape(B * H_CONV, 2 * D)                               # (14, 10)
    w_conv = p_ref[ROW_WCONV:ROW_WCONV + 2 * D, :D * C_OUT]             # (2D, W*C)
    cb = p_ref[ROW_CB:ROW_CB + 1, :D * C_OUT]                           # (1, W*C)
    zf = jnp.dot(ycf, w_conv, preferred_element_type=jnp.float32) + cb  # (14, 80)
    zf = jnp.maximum(zf, 0.0)                                           # relu

    # ---- batch norm (training=True -> biased batch stats, per channel) ------
    def chan_mean(rowvec):   # (1, W*C) -> (1, C): mean over the W lane blocks
        acc = rowvec[:, 0:C_OUT]
        for w in range(1, D):
            acc = acc + rowvec[:, w * C_OUT:(w + 1) * C_OUT]
        return acc * (1.0 / D)

    def chan_tile(cvec):     # (1, C) -> (1, W*C): repeat across the W lane blocks
        return jnp.concatenate([cvec] * D, axis=-1)

    gamma = p_ref[ROW_GAMMA:ROW_GAMMA + 1, :C_OUT]                      # (1, C)
    beta = p_ref[ROW_BETA:ROW_BETA + 1, :C_OUT]                         # (1, C)
    mu_c = chan_mean(jnp.mean(zf, axis=0, keepdims=True))               # (1, C)
    diff = zf - chan_tile(mu_c)
    var_c = chan_mean(jnp.mean(diff * diff, axis=0, keepdims=True))     # (1, C)
    scale_c = gamma * jax.lax.rsqrt(var_c + BN_EPS)
    zn = diff * chan_tile(scale_c) + chan_tile(beta)                    # (14, 80)

    # ---- max_pool2d(2,2,0) + flatten + final linear --------------------------
    z3 = zn.reshape(B, H_CONV, D * C_OUT)                               # (B, 7, 80)
    zh = jnp.max(z3[:, :2 * PH, :].reshape(B, PH, 2, D * C_OUT), axis=2)  # pool H
    cols = [jnp.maximum(zh[:, :, (2 * j) * C_OUT:(2 * j + 1) * C_OUT],
                        zh[:, :, (2 * j + 1) * C_OUT:(2 * j + 2) * C_OUT])
            for j in range(PW)]                                         # pool W
    pooled = jnp.concatenate(cols, axis=-1)                             # (B, PH, PW*C)
    flat = pooled.reshape(B, N_FLAT)          # order (i, j, c); W2 pre-permuted

    w2 = p_ref[ROW_W2:ROW_W2 + N_OUT, :N_FLAT]                          # (N_OUT, N_FLAT)
    b2 = p_ref[ROW_B2:ROW_B2 + 1, :N_OUT]                               # (1, N_OUT)
    out = jax.lax.dot_general(flat, w2, (((1,), (1,)), ((), ())),
                              preferred_element_type=jnp.float32) + b2
    out_ref[...] = out


# ------------------------------ wrapper --------------------------------------
def _pack_params(p):
    """Pack all parameters into one (P_ROWS, 128) f32 buffer (single DMA)."""
    w_qkv = jnp.concatenate([p['Q'].T, p['K'].T, p['V'].T], axis=1)      # (D, 3D)
    b_qkv = jnp.concatenate([p['Qb'], p['Kb'], p['Vb']], axis=1)         # (1, 3D)
    cw0 = p['Wc'][:, 0, 0, 0]                                            # conv tap kh=0
    cw1 = p['Wc'][:, 0, 1, 0]                                            # conv tap kh=1
    eye = jnp.eye(D, dtype=jnp.float32)
    # block-diagonal conv weight: Wconv[w, w'*C + c]   = eye[w,w'] * cw0[c]
    #                             Wconv[D+w, w'*C + c] = eye[w,w'] * cw1[c]
    w_conv = jnp.concatenate(
        [(eye[:, :, None] * cw0[None, None, :]).reshape(D, D * C_OUT),
         (eye[:, :, None] * cw1[None, None, :]).reshape(D, D * C_OUT)], axis=0)
    cb_rep = jnp.tile(p['bc'], D)                                        # (D*C,)
    # W2[o, c*PH*PW + i*PW + j] -> w2p[o, i*PW*C + j*C + c] (matches NCHW flatten)
    w2p = (p['W2'].reshape(N_OUT, C_OUT, PH, PW)
           .transpose(2, 3, 1, 0).reshape(N_FLAT, N_OUT).T)              # (N_OUT, N_FLAT)

    buf = jnp.zeros((P_ROWS, P_COLS), jnp.float32)
    buf = buf.at[ROW_WQKV:ROW_WQKV + D, :3 * D].set(w_qkv)
    buf = buf.at[ROW_BQKV, :3 * D].set(b_qkv[0])
    buf = buf.at[ROW_W1T:ROW_W1T + D, :D].set(p['W1'].T)
    buf = buf.at[ROW_B1, :D].set(p['b1'])
    buf = buf.at[ROW_WCONV:ROW_WCONV + 2 * D, :D * C_OUT].set(w_conv)
    buf = buf.at[ROW_CB, :D * C_OUT].set(cb_rep)
    buf = buf.at[ROW_GAMMA, :C_OUT].set(p['gamma'])
    buf = buf.at[ROW_BETA, :C_OUT].set(p['beta'])
    buf = buf.at[ROW_W2:ROW_W2 + N_OUT, :N_FLAT].set(w2p)
    buf = buf.at[ROW_B2, :N_OUT].set(p['b2'])
    return buf


@jax.jit
def learner_forward(x, params):
    packed = _pack_params(params)
    return pl.pallas_call(
        learner_kernel,
        out_shape=jax.ShapeDtypeStruct((x.shape[0], N_OUT), jnp.float32),
        in_specs=[pl.BlockSpec(memory_space=pltpu.MemorySpace.VMEM),
                  pl.BlockSpec(memory_space=pltpu.MemorySpace.VMEM)],
        out_specs=pl.BlockSpec(memory_space=pltpu.MemorySpace.VMEM),
        cost_estimate=pl.CostEstimate(flops=32_000, transcendentals=160,
                                      bytes_accessed=17_000),
    )(x, packed)
    # TODO(synk): a batch/task grid axis (for v7x dual-TC) is intentionally not
    # added: BN batch statistics couple the whole batch, and B=2 here.


# ---------------------- deterministic parameter init -------------------------
def init_params(key):
    ks = jax.random.split(key, 6)

    def kaiming(k, shape, fan_in):
        return (jax.random.normal(k, shape, jnp.float32)
                * jnp.sqrt(2.0 / fan_in)).astype(jnp.float32)

    return dict(
        Q=kaiming(ks[0], (D, D), D * D),        # heads=1 ([1,D,D] squeezed)
        Qb=jnp.zeros((1, D), jnp.float32),
        K=kaiming(ks[1], (D, D), D * D),
        Kb=jnp.zeros((1, D), jnp.float32),
        V=kaiming(ks[2], (D, D), D * D),
        Vb=jnp.zeros((1, D), jnp.float32),
        W1=kaiming(ks[3], (D, D), D),
        b1=jnp.zeros((D,), jnp.float32),
        Wc=kaiming(ks[4], (C_OUT, 1, KH, 1), KH),   # PyTorch conv2d weight layout
        bc=jnp.zeros((C_OUT,), jnp.float32),
        gamma=jnp.ones((C_OUT,), jnp.float32),
        beta=jnp.zeros((C_OUT,), jnp.float32),
        W2=kaiming(ks[5], (N_OUT, N_FLAT), N_FLAT),
        b2=jnp.zeros((N_OUT,), jnp.float32),
    )
    # TODO(synk): BN running_mean/running_var updates (training bookkeeping) are
    # not modeled; they do not affect the forward output when bn_training=True.


# ------------------------ pure-JAX reference (NCHW) ---------------------------
def reference_forward(x, p):
    mask = jnp.sum(jnp.abs(x), axis=-1) == 0
    q = jnp.einsum('bld,ed->ble', x, p['Q']) + p['Qb']
    k = jnp.einsum('bld,ed->ble', x, p['K']) + p['Kb']
    v = jnp.einsum('bld,ed->ble', x, p['V']) + p['Vb']
    score = jnp.einsum('bie,bje->bij', q, k)
    mask2 = mask[:, None, :] | mask[:, :, None]
    score = jnp.where(mask2, NEG_INF, score)
    att = jax.nn.softmax(score, axis=-1)
    y = jnp.einsum('bij,bje->bie', att, v)
    y = jnp.where(mask[:, :, None], 0.0, y)
    y = y @ p['W1'].T + p['b1']
    y = jnp.maximum(y, 0.0)
    w0 = p['Wc'][:, 0, 0, 0]
    w1 = p['Wc'][:, 0, 1, 0]
    z = (y[:, None, :-1, :] * w0[None, :, None, None]
         + y[:, None, 1:, :] * w1[None, :, None, None]
         + p['bc'][None, :, None, None])                     # [B, C, H, W] NCHW
    z = jnp.maximum(z, 0.0)
    mu = jnp.mean(z, axis=(0, 2, 3), keepdims=True)
    var = jnp.mean((z - mu) ** 2, axis=(0, 2, 3), keepdims=True)
    z = ((z - mu) / jnp.sqrt(var + BN_EPS)
         * p['gamma'][None, :, None, None] + p['beta'][None, :, None, None])
    zp = z[:, :, :PH * 2, :PW * 2].reshape(x.shape[0], C_OUT, PH, 2, PW, 2)
    zp = zp.max(axis=(3, 5))
    flat = zp.reshape(x.shape[0], -1)
    return flat @ p['W2'].T + p['b2']


# ---------------------------------- main --------------------------------------
if __name__ == "__main__":
    key = jax.random.PRNGKey(0)
    kx, kp = jax.random.split(key)
    x = jax.random.normal(kx, (B, L, D), jnp.float32)
    x = x.at[1, 6:, :].set(0.0)          # zero rows -> exercises the padding mask
    params = init_params(kp)

    out = learner_forward(x, params)
    out = jax.block_until_ready(out)

    ref = reference_forward(x, params)
    assert out.shape == (B, N_OUT), out.shape
    assert bool(jnp.all(jnp.isfinite(out)))
    assert bool(jnp.allclose(out, ref, rtol=1e-2, atol=1e-2)), (out, ref)
    print("KERNEL_OK")
</pallas_src>

<mosaic_0001>
module attributes {stable_mosaic.version = 11 : i64} {
  func.func @learner_kernel(%arg0: memref<2x8x5xf32, #tpu.memory_space<vmem>>, %arg1: memref<32x128xf32, #tpu.memory_space<vmem>>, %arg2: memref<2x2xf32, #tpu.memory_space<vmem>>) attributes {dimension_semantics = [], scalar_prefetch = 0 : i64, scratch_operands = 0 : i64, tpu.core_type = #tpu.core_type<tc>} {
    %c0 = arith.constant 0 : index
    %c0_0 = arith.constant 0 : index
    %c0_1 = arith.constant 0 : index
    %0 = vector.load %arg0[%c0, %c0_0, %c0_1] : memref<2x8x5xf32, #tpu.memory_space<vmem>>, vector<2x8x5xf32>
    %1 = math.absf %0 : vector<2x8x5xf32>
    %cst = arith.constant dense<0.000000e+00> : vector<2x8xf32>
    %2 = vector.multi_reduction <add>, %1, %cst [2] : vector<2x8x5xf32> to vector<2x8xf32>
    %cst_2 = arith.constant 0.000000e+00 : f32
    %3 = vector.broadcast %cst_2 : f32 to vector<2x8xf32>
    %4 = arith.cmpf oeq, %2, %3 : vector<2x8xf32>
    %5 = vector.shape_cast %0 : vector<2x8x5xf32> to vector<16x5xf32>
    %c0_3 = arith.constant 0 : index
    %c0_4 = arith.constant 0 : index
    %6 = vector.load %arg1[%c0_3, %c0_4] : memref<32x128xf32, #tpu.memory_space<vmem>>, vector<5x15xf32>
    %c5 = arith.constant 5 : index
    %c0_5 = arith.constant 0 : index
    %7 = vector.load %arg1[%c5, %c0_5] : memref<32x128xf32, #tpu.memory_space<vmem>>, vector<1x15xf32>
    %cst_6 = arith.constant dense<0.000000e+00> : vector<16x15xf32>
    %8 = tpu.matmul %5, %6, %cst_6 {dimension_numbers = #tpu.dot_dimension_numbers<[1], [0], [0], [1], [0, 0, 1, 1], [], []>} : vector<16x5xf32>, vector<5x15xf32>, vector<16x15xf32> -> vector<16x15xf32>
    %9 = vector.broadcast %7 : vector<1x15xf32> to vector<16x15xf32>
    %10 = arith.addf %8, %9 : vector<16x15xf32>
    %11 = vector.extract_strided_slice %10 {offsets = [0, 0], sizes = [16, 5], strides = [1, 1]} : vector<16x15xf32> to vector<16x5xf32>
    %12 = vector.shape_cast %11 : vector<16x5xf32> to vector<2x8x5xf32>
    %13 = vector.extract_strided_slice %10 {offsets = [0, 5], sizes = [16, 5], strides = [1, 1]} : vector<16x15xf32> to vector<16x5xf32>
    %14 = vector.shape_cast %13 : vector<16x5xf32> to vector<2x8x5xf32>
    %15 = vector.extract_strided_slice %10 {offsets = [0, 10], sizes = [16, 5], strides = [1, 1]} : vector<16x15xf32> to vector<16x5xf32>
    %16 = vector.shape_cast %15 : vector<16x5xf32> to vector<2x8x5xf32>
    "tpu.trace_start"() <{level = 10 : i32, message = "bie,bje->bij"}> : () -> ()
    %cst_7 = arith.constant dense<0.000000e+00> : vector<2x8x8xf32>
    %17 = tpu.matmul %12, %14, %cst_7 {dimension_numbers = #tpu.dot_dimension_numbers<[2], [2], [1], [1], [0, 0, 0, 1, 1, 1], [0], [0]>} : vector<2x8x5xf32>, vector<2x8x5xf32>, vector<2x8x8xf32> -> vector<2x8x8xf32>
    "tpu.trace_stop"() : () -> ()
    %18 = vector.shape_cast %4 : vector<2x8xi1> to vector<2x1x8xi1>
    %19 = vector.shape_cast %4 : vector<2x8xi1> to vector<2x8x1xi1>
    %20 = vector.broadcast %18 : vector<2x1x8xi1> to vector<2x8x8xi1>
    %21 = vector.broadcast %19 : vector<2x8x1xi1> to vector<2x8x8xi1>
    %22 = arith.ori %20, %21 : vector<2x8x8xi1>
    %cst_8 = arith.constant -1.000000e+09 : f32
    %23 = vector.broadcast %cst_8 : f32 to vector<2x8x8xf32>
    %24 = arith.select %22, %23, %17 : vector<2x8x8xi1>, vector<2x8x8xf32>
    %cst_9 = arith.constant dense<0xFF800000> : vector<2x8xf32>
    %25 = vector.multi_reduction <maximumf>, %24, %cst_9 [2] : vector<2x8x8xf32> to vector<2x8xf32>
    %26 = vector.shape_cast %25 : vector<2x8xf32> to vector<2x8x1xf32>
    %27 = vector.broadcast %26 : vector<2x8x1xf32> to vector<2x8x8xf32>
    %28 = arith.subf %24, %27 : vector<2x8x8xf32>
    %29 = math.exp %28 : vector<2x8x8xf32>
    %cst_10 = arith.constant dense<0.000000e+00> : vector<2x8xf32>
    %30 = vector.multi_reduction <add>, %29, %cst_10 [2] : vector<2x8x8xf32> to vector<2x8xf32>
    %31 = vector.shape_cast %30 : vector<2x8xf32> to vector<2x8x1xf32>
    %32 = vector.broadcast %31 : vector<2x8x1xf32> to vector<2x8x8xf32>
    %33 = arith.divf %29, %32 : vector<2x8x8xf32>
    "tpu.trace_start"() <{level = 10 : i32, message = "bij,bje->bie"}> : () -> ()
    %cst_11 = arith.constant dense<0.000000e+00> : vector<2x8x5xf32>
    %34 = tpu.matmul %33, %16, %cst_11 {dimension_numbers = #tpu.dot_dimension_numbers<[2], [1], [1], [2], [0, 0, 0, 1, 1, 2], [0], [0]>} : vector<2x8x8xf32>, vector<2x8x5xf32>, vector<2x8x5xf32> -> vector<2x8x5xf32>
    "tpu.trace_stop"() : () -> ()
    %35 = vector.shape_cast %4 : vector<2x8xi1> to vector<2x8x1xi1>
    %cst_12 = arith.constant 0.000000e+00 : f32
    %36 = vector.shape_cast %35 : vector<2x8x1xi1> to vector<2x8x1xi1>
    %37 = vector.broadcast %36 : vector<2x8x1xi1> to vector<2x8x5xi1>
    %38 = vector.broadcast %cst_12 : f32 to vector<2x8x5xf32>
    %39 = arith.select %37, %38, %34 : vector<2x8x5xi1>, vector<2x8x5xf32>
    %40 = vector.shape_cast %39 : vector<2x8x5xf32> to vector<16x5xf32>
    %c6 = arith.constant 6 : index
    %c0_13 = arith.constant 0 : index
    %41 = vector.load %arg1[%c6, %c0_13] : memref<32x128xf32, #tpu.memory_space<vmem>>, vector<5x5xf32>
    %c11 = arith.constant 11 : index
    %c0_14 = arith.constant 0 : index
    %42 = vector.load %arg1[%c11, %c0_14] : memref<32x128xf32, #tpu.memory_space<vmem>>, vector<1x5xf32>
    %cst_15 = arith.constant dense<0.000000e+00> : vector<16x5xf32>
    %43 = tpu.matmul %40, %41, %cst_15 {dimension_numbers = #tpu.dot_dimension_numbers<[1], [0], [0], [1], [0, 0, 1, 1], [], []>} : vector<16x5xf32>, vector<5x5xf32>, vector<16x5xf32> -> vector<16x5xf32>
    %44 = vector.broadcast %42 : vector<1x5xf32> to vector<16x5xf32>
    %45 = arith.addf %43, %44 : vector<16x5xf32>
    %cst_16 = arith.constant 0.000000e+00 : f32
    %46 = vector.broadcast %cst_16 : f32 to vector<16x5xf32>
    %47 = arith.maximumf %45, %46 : vector<16x5xf32>
    %48 = vector.shape_cast %47 : vector<16x5xf32> to vector<2x8x5xf32>
    %49 = vector.extract_strided_slice %48 {offsets = [0, 0, 0], sizes = [2, 7, 5], strides = [1, 1, 1]} : vector<2x8x5xf32> to vector<2x7x5xf32>
    %50 = vector.extract_strided_slice %48 {offsets = [0, 1, 0], sizes = [2, 7, 5], strides = [1, 1, 1]} : vector<2x8x5xf32> to vector<2x7x5xf32>
    %51 = tpu.concatenate %49, %50 in 2 : vector<2x7x5xf32>, vector<2x7x5xf32> -> vector<2x7x10xf32>
    %52 = vector.shape_cast %51 : vector<2x7x10xf32> to vector<14x10xf32>
    %c12 = arith.constant 12 : index
    %c0_17 = arith.constant 0 : index
    %53 = vector.load %arg1[%c12, %c0_17] : memref<32x128xf32, #tpu.memory_space<vmem>>, vector<10x80xf32>
    %c22 = arith.constant 22 : index
    %c0_18 = arith.constant 0 : index
    %54 = vector.load %arg1[%c22, %c0_18] : memref<32x128xf32, #tpu.memory_space<vmem>>, vector<1x80xf32>
    %cst_19 = arith.constant dense<0.000000e+00> : vector<14x80xf32>
    %55 = tpu.matmul %52, %53, %cst_19 {dimension_numbers = #tpu.dot_dimension_numbers<[1], [0], [0], [1], [0, 0, 1, 1], [], []>} : vector<14x10xf32>, vector<10x80xf32>, vector<14x80xf32> -> vector<14x80xf32>
    %56 = vector.broadcast %54 : vector<1x80xf32> to vector<14x80xf32>
    %57 = arith.addf %55, %56 : vector<14x80xf32>
    %cst_20 = arith.constant 0.000000e+00 : f32
    %58 = vector.broadcast %cst_20 : f32 to vector<14x80xf32>
    %59 = arith.maximumf %57, %58 : vector<14x80xf32>
    %c23 = arith.constant 23 : index
    %c0_21 = arith.constant 0 : index
    %60 = vector.load %arg1[%c23, %c0_21] : memref<32x128xf32, #tpu.memory_space<vmem>>, vector<1x16xf32>
    %c24 = arith.constant 24 : index
    %c0_22 = arith.constant 0 : index
    %61 = vector.load %arg1[%c24, %c0_22] : memref<32x128xf32, #tpu.memory_space<vmem>>, vector<1x16xf32>
    %cst_23 = arith.constant dense<0.000000e+00> : vector<80xf32>
    %62 = vector.multi_reduction <add>, %59, %cst_23 [0] : vector<14x80xf32> to vector<80xf32>
    %63 = vector.shape_cast %62 : vector<80xf32> to vector<1x80xf32>
    %cst_24 = arith.constant 1.400000e+01 : f32
    %64 = vector.broadcast %cst_24 : f32 to vector<1x80xf32>
    %65 = arith.divf %63, %64 : vector<1x80xf32>
    %66 = vector.extract_strided_slice %65 {offsets = [0, 0], sizes = [1, 16], strides = [1, 1]} : vector<1x80xf32> to vector<1x16xf32>
    %67 = vector.extract_strided_slice %65 {offsets = [0, 16], sizes = [1, 16], strides = [1, 1]} : vector<1x80xf32> to vector<1x16xf32>
    %68 = arith.addf %66, %67 : vector<1x16xf32>
    %69 = vector.extract_strided_slice %65 {offsets = [0, 32], sizes = [1, 16], strides = [1, 1]} : vector<1x80xf32> to vector<1x16xf32>
    %70 = arith.addf %68, %69 : vector<1x16xf32>
    %71 = vector.extract_strided_slice %65 {offsets = [0, 48], sizes = [1, 16], strides = [1, 1]} : vector<1x80xf32> to vector<1x16xf32>
    %72 = arith.addf %70, %71 : vector<1x16xf32>
    %73 = vector.extract_strided_slice %65 {offsets = [0, 64], sizes = [1, 16], strides = [1, 1]} : vector<1x80xf32> to vector<1x16xf32>
    %74 = arith.addf %72, %73 : vector<1x16xf32>
    %cst_25 = arith.constant 2.000000e-01 : f32
    %75 = vector.broadcast %cst_25 : f32 to vector<1x16xf32>
    %76 = arith.mulf %74, %75 : vector<1x16xf32>
    %77 = tpu.concatenate %76, %76, %76, %76, %76 in 1 : vector<1x16xf32>, vector<1x16xf32>, vector<1x16xf32>, vector<1x16xf32>, vector<1x16xf32> -> vector<1x80xf32>
    %78 = vector.broadcast %77 : vector<1x80xf32> to vector<14x80xf32>
    %79 = arith.subf %59, %78 : vector<14x80xf32>
    %80 = arith.mulf %79, %79 : vector<14x80xf32>
    %cst_26 = arith.constant dense<0.000000e+00> : vector<80xf32>
    %81 = vector.multi_reduction <add>, %80, %cst_26 [0] : vector<14x80xf32> to vector<80xf32>
    %82 = vector.shape_cast %81 : vector<80xf32> to vector<1x80xf32>
    %cst_27 = arith.constant 1.400000e+01 : f32
    %83 = vector.broadcast %cst_27 : f32 to vector<1x80xf32>
    %84 = arith.divf %82, %83 : vector<1x80xf32>
    %85 = vector.extract_strided_slice %84 {offsets = [0, 0], sizes = [1, 16], strides = [1, 1]} : vector<1x80xf32> to vector<1x16xf32>
    %86 = vector.extract_strided_slice %84 {offsets = [0, 16], sizes = [1, 16], strides = [1, 1]} : vector<1x80xf32> to vector<1x16xf32>
    %87 = arith.addf %85, %86 : vector<1x16xf32>
    %88 = vector.extract_strided_slice %84 {offsets = [0, 32], sizes = [1, 16], strides = [1, 1]} : vector<1x80xf32> to vector<1x16xf32>
    %89 = arith.addf %87, %88 : vector<1x16xf32>
    %90 = vector.extract_strided_slice %84 {offsets = [0, 48], sizes = [1, 16], strides = [1, 1]} : vector<1x80xf32> to vector<1x16xf32>
    %91 = arith.addf %89, %90 : vector<1x16xf32>
    %92 = vector.extract_strided_slice %84 {offsets = [0, 64], sizes = [1, 16], strides = [1, 1]} : vector<1x80xf32> to vector<1x16xf32>
    %93 = arith.addf %91, %92 : vector<1x16xf32>
    %cst_28 = arith.constant 2.000000e-01 : f32
    %94 = vector.broadcast %cst_28 : f32 to vector<1x16xf32>
    %95 = arith.mulf %93, %94 : vector<1x16xf32>
    %cst_29 = arith.constant 9.99999974E-6 : f32
    %96 = vector.broadcast %cst_29 : f32 to vector<1x16xf32>
    %97 = arith.addf %95, %96 : vector<1x16xf32>
    %98 = math.rsqrt %97 : vector<1x16xf32>
    %99 = arith.mulf %60, %98 : vector<1x16xf32>
    %100 = tpu.concatenate %99, %99, %99, %99, %99 in 1 : vector<1x16xf32>, vector<1x16xf32>, vector<1x16xf32>, vector<1x16xf32>, vector<1x16xf32> -> vector<1x80xf32>
    %101 = vector.broadcast %100 : vector<1x80xf32> to vector<14x80xf32>
    %102 = arith.mulf %79, %101 : vector<14x80xf32>
    %103 = tpu.concatenate %61, %61, %61, %61, %61 in 1 : vector<1x16xf32>, vector<1x16xf32>, vector<1x16xf32>, vector<1x16xf32>, vector<1x16xf32> -> vector<1x80xf32>
    %104 = vector.broadcast %103 : vector<1x80xf32> to vector<14x80xf32>
    %105 = arith.addf %102, %104 : vector<14x80xf32>
    %106 = vector.shape_cast %105 : vector<14x80xf32> to vector<2x7x80xf32>
    %107 = vector.extract_strided_slice %106 {offsets = [0, 0, 0], sizes = [2, 6, 80], strides = [1, 1, 1]} : vector<2x7x80xf32> to vector<2x6x80xf32>
    %108 = vector.shape_cast %107 : vector<2x6x80xf32> to vector<2x3x2x80xf32>
    %cst_30 = arith.constant dense<0xFF800000> : vector<2x3x80xf32>
    %109 = vector.multi_reduction <maximumf>, %108, %cst_30 [2] : vector<2x3x2x80xf32> to vector<2x3x80xf32>
    %110 = vector.extract_strided_slice %109 {offsets = [0, 0, 0], sizes = [2, 3, 16], strides = [1, 1, 1]} : vector<2x3x80xf32> to vector<2x3x16xf32>
    %111 = vector.extract_strided_slice %109 {offsets = [0, 0, 16], sizes = [2, 3, 16], strides = [1, 1, 1]} : vector<2x3x80xf32> to vector<2x3x16xf32>
    %112 = arith.maximumf %110, %111 : vector<2x3x16xf32>
    %113 = vector.extract_strided_slice %109 {offsets = [0, 0, 32], sizes = [2, 3, 16], strides = [1, 1, 1]} : vector<2x3x80xf32> to vector<2x3x16xf32>
    %114 = vector.extract_strided_slice %109 {offsets = [0, 0, 48], sizes = [2, 3, 16], strides = [1, 1, 1]} : vector<2x3x80xf32> to vector<2x3x16xf32>
    %115 = arith.maximumf %113, %114 : vector<2x3x16xf32>
    %116 = tpu.concatenate %112, %115 in 2 : vector<2x3x16xf32>, vector<2x3x16xf32> -> vector<2x3x32xf32>
    %117 = vector.shape_cast %116 : vector<2x3x32xf32> to vector<2x96xf32>
    %c25 = arith.constant 25 : index
    %c0_31 = arith.constant 0 : index
    %118 = vector.load %arg1[%c25, %c0_31] : memref<32x128xf32, #tpu.memory_space<vmem>>, vector<2x96xf32>
    %c27 = arith.constant 27 : index
    %c0_32 = arith.constant 0 : index
    %119 = vector.load %arg1[%c27, %c0_32] : memref<32x128xf32, #tpu.memory_space<vmem>>, vector<1x2xf32>
    %cst_33 = arith.constant dense<0.000000e+00> : vector<2x2xf32>
    %120 = tpu.matmul %117, %118, %cst_33 {dimension_numbers = #tpu.dot_dimension_numbers<[1], [1], [0], [0], [0, 0, 1, 0], [], []>} : vector<2x96xf32>, vector<2x96xf32>, vector<2x2xf32> -> vector<2x2xf32>
    %121 = vector.broadcast %119 : vector<1x2xf32> to vector<2x2xf32>
    %122 = arith.addf %120, %121 : vector<2x2xf32>
    %c0_34 = arith.constant 0 : index
    %c0_35 = arith.constant 0 : index
    %123 = vector.load %arg2[%c0_34, %c0_35] : memref<2x2xf32, #tpu.memory_space<vmem>>, vector<2x2xf32>
    tpu.vector_store %arg2[%c0_34, %c0_35], %122 {strides = array<i32>} : memref<2x2xf32, #tpu.memory_space<vmem>>, vector<2x2xf32>,
    return
  }
}

</mosaic_0001>

<bundles_post_ra>
// kernel: learner_forward.1
= control target key start
LH: loop header
LB: loop body
LE: loop exit
PB: predicated region body
PF: predicated region fallthrough
CT: control target
= control target key end

     0   :  { %vm34_vm0 = vcmask 1044480   ;;  %vm2372_vm1 = vcmask 39936   ;;  %s2368_s0 = inlined_call_operand.vmem [shape: f32[2,8,5], index: 0, kind: input, shape index: {}]   ;;  %s2369_s1 = inlined_call_operand.vmem [shape: f32[32,128], index: 1, kind: input, shape index: {}]   ;;  %s2370_s2 = inlined_call_operand.hbm [shape: f32[2,2], index: 2, kind: output, shape index: {}]  }
   0x1   :  { %v25_v0 = vld [vmem:[%s2369_s1] sm:$0x1f] }
   0x2   :  { %v12_v1 = vld [vmem:[%s2368_s0] sm:$0xff]  ;;  %1515 = vmatpush.msk.msra.mxu0 %vm34_vm0, %v25_v0 }
   0x3   :  { %1516 = vmatmul.msk.f32.vlgmr.msra.gmra.mxu0 %vm2372_vm1, %v12_v1 }
   0x4   :  { %7 = vsyncpa [#allocation3], 0  ;;  %v13_v2 = vld [vmem:[%s2368_s0 + $0x8] sm:$0xff]  ;;  %v1554_v3 = vld [vmem:[%s2369_s1 + $0x5] ss:$0 sm:$0xff]  ;;  %s1652_s17 = smov 123   ;;  %v172_v10 = vlaneseq }
   0x5   :  { %v15_v8 = vand.u32 2147483647, %v13_v2  ;;  %v14_v9 = vand.u32 2147483647, %v12_v1  ;;  %v1653_v27 = vmov 0   ;;  %s1654_s0 = smov 118  }
   0x6   :  { %v173_v13 = vshrl.u32 %v172_v10, 7  ;;  %s1655_s22 = smov 5   ;;  %s1657_s29 = smov 80  }
   0x7   :  { %v20_v11 = vsel %vm2372_vm1, %v15_v8, 0.0  ;;  %v17_v12 = vsel %vm2372_vm1, %v14_v9, 0.0  ;;  %s1658_s30 = smov 96   ;;  %s1659_s3 = smov 112  }
   0x8   :  { %21 = vadd.xlane.f32.xlu2 %v20_v11  ;;  %18 = vadd.xlane.f32.xlu1 %v17_v12  ;;  %s1660_s4 = smov 64   ;;  %s1661_s5 = smov 48  }
   0x9   :  { %1550 = vset.pattern.permute.xlu0 %v173_v13  ;;  %1549 = vset.pattern.permute.xlu2 %v173_v13  ;;  %s1662_s6 = smov 32   ;;  %s1663_s7 = smov 16  }
   0xa   :  { %1548 = vset.pattern.permute.xlu1 %v173_v13  ;;  %s1666_s16 = smov [#allocation2]   ;;  %s1506_s19 = sshll.u32 %s2370_s2, 4  ;;  %s1507_s19 = int_to_ptr.hbm [resolvable:$true] %s1506_s19 }
   0xb   :  { %1517 = vmatmul.msk.f32.gmra.mxu0 %vm2372_vm1, %v13_v2 }
  0x7b   :  { %v1712_v35 = vpop.xlane.xlu1 %18  ;;  %v1717_v37 = vpop.xlane.xlu2 %21 }
  0x7c   :  { %vm2373_vm2 = vcmp.eq.f32.partialorder %v1712_v35, 0.0  ;;  %vm2371_vm13 = vcmp.eq.f32.partialorder %v1717_v37, 0.0 }
  0x7d   :  { %v119_v36 = vsel %vm2373_vm2, 1, %v1653_v27  ;;  %v120_v55 = vsel %vm2371_vm13, 1, %v1653_v27 }
  0x7e   :  { %v122_v38 = vperm.slane %v119_v36, 1  ;;  %v123_v41 = vperm.slane %v119_v36, 2  ;;  %v121_v42 = vperm.slane %v119_v36, 0  ;;  %v124_v46 = vperm.slane %v119_v36, 3 }
  0x7f   :  { %v125_v48 = vperm.slane %v119_v36, 4  ;;  %v126_v52 = vperm.slane %v119_v36, 5  ;;  %v127_v54 = vperm.slane %v119_v36, 6  ;;  %v130_v56 = vperm.slane %v120_v55, 1 }
  0x80   :  { %v55_v4 = vpop.f32.mrf.mxu0  ;;  %vm138_vm3 = vcmp.ne.s32.totalorder %v122_v38, 0  ;;  %vm139_vm5 = vcmp.ne.s32.totalorder %v123_v41, 0  ;;  %vm137_vm6 = vcmp.ne.s32.totalorder %v121_v42, 0  ;;  %vm140_vm9 = vcmp.ne.s32.totalorder %v124_v46, 0 }
  0x81   :  { %v1697_v5 = vadd.f32 %v1554_v3, %v55_v4  ;;  %vm154_vm4 = vmor %vm2373_vm2, %vm138_vm3  ;;  %vm141_vm10 = vcmp.ne.s32.totalorder %v125_v48, 0  ;;  %vm142_vm14 = vcmp.ne.s32.totalorder %v126_v52, 0  ;;  %vm143_vm15 = vcmp.ne.s32.totalorder %v127_v54, 0 }
  0x82   :  { %vm155_vm7 = vmor %vm2373_vm2, %vm139_vm5  ;;  %v128_v60 = vperm.slane %v119_v36, 7  ;;  %v129_v62 = vperm.slane %v120_v55, 0  ;;  %vm146_vm5 = vcmp.ne.s32.totalorder %v130_v56, 0  ;;  %v132_v8 = vperm.slane %v120_v55, 3 }
  0x83   :  { %62 = vrot.lane.b32.xlu0 %v1697_v5, %s1652_s17  ;;  %vm153_vm8 = vmor %vm2373_vm2, %vm137_vm6  ;;  %v133_v13 = vperm.slane %v120_v55, 4 }
  0x84   :  { %vm156_vm11 = vmor %vm2373_vm2, %vm140_vm9  ;;  %vm144_vm6 = vcmp.ne.s32.totalorder %v128_v60, 0 }
  0x85   :  { %vm157_vm12 = vmor %vm2373_vm2, %vm141_vm10 }
  0x86   :  { %vm158_vm3 = vmor %vm2373_vm2, %vm142_vm14 }
  0x87   :  { %vm160_vm9 = vmor %vm2373_vm2, %vm144_vm6 }
  0x88   :  { %v58_v6 = vpop.f32.mrf.mxu0 }
  0x89   :  { %v1700_v7 = vadd.f32 %v1554_v3, %v58_v6  ;;  %v131_v3 = vperm.slane %v120_v55, 2 }
  0x8b   :  { %89 = vrot.lane.b32.xlu0 %v1700_v7, %s1652_s17  ;;  %s1504_s17 = sshll.u32 %s1666_s16, 4  ;;  %s1505_s17 = int_to_ptr.vmem [resolvable:$true] %s1504_s17 }
  0xf5   :  { %v63_v14 = vpop.permute.xlu0 %62 }
  0xf6   :  { %1518 = vmatpush.xpose.msk.msra.mxu1 %vm2372_vm1, %v63_v14 }
  0xf9   :  { %1519 = vmatmul.msk.f32.vlgmr.msra.gmra.mxu1 %vm2372_vm1, %v1697_v5 }
  0xfd   :  { %v90_v15 = vpop.permute.xlu0 %89 }
  0xfe   :  { %1520 = vmatpush.xpose.msk.msra.mxu2 %vm2372_vm1, %v90_v15  ;;  %v134_v15 = vperm.slane %v120_v55, 5 }
 0x101   :  { %1521 = vmatmul.msk.f32.vlgmr.msra.gmra.mxu2 %vm2372_vm1, %v1700_v7 }
 0x176   :  { %v85_v16 = vpop.f32.mrf.mxu1 }
 0x177   :  { %v185_v17 = vperm.slane %v85_v16, 2  ;;  %v178_v18 = vperm.slane %v85_v16, 1  ;;  %v171_v19 = vperm.slane %v85_v16, 0  ;;  %v192_v20 = vperm.slane %v85_v16, 3 }
 0x178   :  { %v199_v21 = vperm.slane %v85_v16, 4  ;;  %v206_v24 = vperm.slane %v85_v16, 5  ;;  %v213_v25 = vperm.slane %v85_v16, 6  ;;  %v220_v26 = vperm.slane %v85_v16, 7 }
 0x179   :  { %190 = vperm.xlu0 %1550, %v185_v17   ;;  %183 = vperm.xlu2 %1549, %v178_v18  }
 0x17a   :  { %176 = vperm.xlu1 %1548, %v171_v19   ;;  %v135_v19 = vperm.slane %v120_v55, 6 }
 0x181   :  { %197 = vperm.xlu0 %1550, %v192_v20  }
 0x182   :  { %204 = vperm.xlu1 %1548, %v199_v21   ;;  %v136_v21 = vperm.slane %v120_v55, 7 }
 0x184   :  { %v112_v22 = vpop.f32.mrf.mxu2 }
 0x185   :  { %v234_v23 = vperm.slane %v112_v22, 1  ;;  %v227_v28 = vperm.slane %v112_v22, 0  ;;  %v241_v29 = vperm.slane %v112_v22, 2  ;;  %v248_v30 = vperm.slane %v112_v22, 3 }
 0x186   :  { %v255_v31 = vperm.slane %v112_v22, 4  ;;  %v262_v32 = vperm.slane %v112_v22, 5  ;;  %v269_v33 = vperm.slane %v112_v22, 6  ;;  %v276_v34 = vperm.slane %v112_v22, 7 }
 0x187   :  { %239 = vperm.xlu2 %1549, %v234_v23  }
 0x189   :  { %211 = vperm.xlu0 %1550, %v206_v24  }
 0x18a   :  { %218 = vperm.xlu1 %1548, %v213_v25  }
 0x18f   :  { %1551 = vset.pattern.permute.xlu2 %v1653_v27 }
 0x191   :  { %225 = vperm.xlu0 %1550, %v220_v26  }
 0x192   :  { %232 = vperm.xlu1 %1548, %v227_v28  }
 0x199   :  { %246 = vperm.xlu0 %1550, %v241_v29   ;;  %v1803_v29 = vand.u32 127, %v172_v10 }
 0x19a   :  { %253 = vperm.xlu1 %1548, %v248_v30  }
 0x1a1   :  { %260 = vperm.xlu0 %1550, %v255_v31  }
 0x1a2   :  { %267 = vperm.xlu1 %1548, %v262_v32  }
 0x1a9   :  { %274 = vperm.xlu0 %1550, %v269_v33  }
 0x1aa   :  { %281 = vperm.xlu1 %1548, %v276_v34  }
 0x1b1   :  { %1552 = vset.pattern.permute.xlu0 %v1653_v27 }
 0x1b2   :  { %1553 = vset.pattern.permute.xlu1 %v1653_v27 }
 0x1d3   :  { %v184_v39 = vpop.permute.xlu2 %183 }
 0x1d4   :  { %v1721_v40 = vsel %vm154_vm4, -1e+09, %v184_v39  ;;  %vm159_vm4 = vmor %vm2373_vm2, %vm143_vm15 }
 0x1d5   :  { %335 = vperm.xlu0 %1552, %v1721_v40  }
 0x1e1   :  { %v240_v63 = vpop.permute.xlu2 %239 }
 0x1eb   :  { %v191_v43 = vpop.permute.xlu0 %190 }
 0x1ec   :  { %v1726_v44 = vsel %vm155_vm7, -1e+09, %v191_v43  ;;  %v177_v45 = vpop.permute.xlu1 %176  ;;  %vm145_vm7 = vcmp.ne.s32.totalorder %v129_v62, 0 }
 0x1ed   :  { %v1730_v47 = vsel %vm153_vm8, -1e+09, %v177_v45  ;;  %338 = vperm.xlu1 %1553, %v1726_v44   ;;  %vm162_vm8 = vmor %vm2371_vm13, %vm146_vm5 }
 0x1ee   :  { %332 = vperm.xlu2 %1551, %v1730_v47   ;;  %vm161_vm10 = vmor %vm2371_vm13, %vm145_vm7  ;;  %v1765_v4 = vsel %vm162_vm8, -1e+09, %v240_v63  ;;  %vm151_vm7 = vcmp.ne.s32.totalorder %v135_v19, 0  ;;  %vm152_vm8 = vcmp.ne.s32.totalorder %v136_v21, 0 }
 0x1f3   :  { %v198_v49 = vpop.permute.xlu0 %197 }
 0x1f4   :  { %v1736_v50 = vsel %vm156_vm11, -1e+09, %v198_v49  ;;  %v205_v51 = vpop.permute.xlu1 %204  ;;  %vm147_vm11 = vcmp.ne.s32.totalorder %v131_v3, 0 }
 0x1f5   :  { %v1741_v53 = vsel %vm157_vm12, -1e+09, %v205_v51  ;;  %vm148_vm12 = vcmp.ne.s32.totalorder %v132_v8, 0  ;;  %vm163_vm14 = vmor %vm2371_vm13, %vm147_vm11  ;;  %vm397_vm11 = vcmask 1041409  }
 0x1f6   :  { %341 = vperm.xlu2 %1551, %v1736_v50   ;;  %344 = vperm.xlu1 %1553, %v1741_v53   ;;  %vm164_vm15 = vmor %vm2371_vm13, %vm148_vm12  ;;  %vm399_vm12 = vcmask 1042434  }
 0x1fb   :  { %v212_v57 = vpop.permute.xlu0 %211 }
 0x1fc   :  { %v1749_v58 = vsel %vm158_vm3, -1e+09, %v212_v57  ;;  %v219_v59 = vpop.permute.xlu1 %218  ;;  %vm149_vm3 = vcmp.ne.s32.totalorder %v133_v13, 0 }
 0x1fd   :  { %v1753_v61 = vsel %vm159_vm4, -1e+09, %v219_v59  ;;  %vm150_vm4 = vcmp.ne.s32.totalorder %v134_v15, 0  ;;  %vm165_vm5 = vmor %vm2371_vm13, %vm149_vm3  ;;  %vm2377_vm3 = vcmask 1045509  }
 0x1fe   :  { %347 = vperm.xlu2 %1551, %v1749_v58   ;;  %350 = vperm.xlu0 %1552, %v1753_v61   ;;  %vm166_vm6 = vmor %vm2371_vm13, %vm150_vm4  ;;  %vm2376_vm4 = vcmask 1046534  }
 0x203   :  { %v226_v0 = vpop.permute.xlu0 %225 }
 0x204   :  { %v1761_v1 = vsel %vm160_vm9, -1e+09, %v226_v0  ;;  %v233_v2 = vpop.permute.xlu1 %232  ;;  %vm167_vm9 = vmor %vm2371_vm13, %vm151_vm7 }
 0x205   :  { %v1767_v6 = vsel %vm161_vm10, -1e+09, %v233_v2  ;;  %353 = vperm.xlu1 %1553, %v1761_v1   ;;  %vm168_vm10 = vmor %vm2371_vm13, %vm152_vm8 }
 0x206   :  { %359 = vperm.xlu0 %1552, %v1765_v4   ;;  %356 = vperm.xlu2 %1551, %v1767_v6  }
 0x20b   :  { %v247_v9 = vpop.permute.xlu0 %246 }
 0x20c   :  { %v1774_v11 = vsel %vm163_vm14, -1e+09, %v247_v9  ;;  %v254_v12 = vpop.permute.xlu1 %253  ;;  %vm401_vm14 = vcmask 1043459  }
 0x20d   :  { %v1778_v14 = vsel %vm164_vm15, -1e+09, %v254_v12  ;;  %362 = vperm.xlu1 %1553, %v1774_v11   ;;  %vm403_vm15 = vcmask 1044484  }
 0x20e   :  { %365 = vperm.xlu2 %1551, %v1778_v14  }
 0x213   :  { %v261_v16 = vpop.permute.xlu0 %260 }
 0x214   :  { %v1784_v17 = vsel %vm165_vm5, -1e+09, %v261_v16  ;;  %v268_v18 = vpop.permute.xlu1 %267  ;;  %vm2375_vm5 = vcmask 1047559  }
 0x215   :  { %v1788_v20 = vsel %vm166_vm6, -1e+09, %v268_v18  ;;  %368 = vperm.xlu0 %1552, %v1784_v17   ;;  %vm2374_vm6 = vcmask 64512  }
 0x216   :  { %371 = vperm.xlu1 %1553, %v1788_v20  }
 0x21b   :  { %v275_v22 = vpop.permute.xlu0 %274 }
 0x21c   :  { %v1794_v23 = vsel %vm167_vm9, -1e+09, %v275_v22  ;;  %v282_v24 = vpop.permute.xlu1 %281 }
 0x21d   :  { %v1798_v25 = vsel %vm168_vm10, -1e+09, %v282_v24  ;;  %374 = vperm.xlu2 %1551, %v1794_v23  }
 0x21e   :  { %377 = vperm.xlu0 %1552, %v1798_v25  }
 0x247   :  { %v336_v30 = vpop.permute.xlu0 %335 }
 0x248   :  { %v333_v26 = vpop.permute.xlu2 %332  ;;  %v382_v31 = vperm.slane %v336_v30, %v1803_v29 }
 0x249   :  { %v381_v32 = vperm.slane %v333_v26, %v1803_v29 }
 0x24b   :  { %v398_v36 = vsel %vm397_vm11, %v382_v31, %v381_v32 }
 0x250   :  { %v342_v28 = vpop.permute.xlu2 %341 }
 0x251   :  { %v384_v10 = vperm.slane %v342_v28, %v1803_v29 }
 0x258   :  { %v348_v38 = vpop.permute.xlu2 %347 }
 0x259   :  { %v386_v48 = vperm.slane %v348_v38, %v1803_v29 }
 0x25f   :  { %v339_v27 = vpop.permute.xlu1 %338 }
 0x260   :  { %v383_v33 = vperm.slane %v339_v27, %v1803_v29  ;;  %v357_v56 = vpop.permute.xlu2 %356 }
 0x261   :  { %v389_v0 = vperm.slane %v357_v56, %v1803_v29 }
 0x262   :  { %v400_v39 = vsel %vm399_vm12, %v383_v33, %v398_v36 }
 0x263   :  { %v402_v43 = vsel %vm401_vm14, %v384_v10, %v400_v39 }
 0x268   :  { %v345_v34 = vpop.permute.xlu1 %344  ;;  %v366_v2 = vpop.permute.xlu2 %365 }
 0x269   :  { %v385_v41 = vperm.slane %v345_v34, %v1803_v29  ;;  %v392_v15 = vperm.slane %v366_v2, %v1803_v29 }
 0x26b   :  { %v404_v45 = vsel %vm403_vm15, %v385_v41, %v402_v43 }
 0x26c   :  { %v406_v52 = vsel %vm2377_vm3, %v386_v48, %v404_v45 }
 0x270   :  { %v351_v42 = vpop.permute.xlu0 %350 }
 0x271   :  { %v387_v46 = vperm.slane %v351_v42, %v1803_v29 }
 0x273   :  { %v408_v54 = vsel %vm2376_vm4, %v387_v46, %v406_v52 }
 0x277   :  { %v354_v49 = vpop.permute.xlu1 %353  ;;  %v375_v21 = vpop.permute.xlu2 %374 }
 0x278   :  { %v388_v51 = vperm.slane %v354_v49, %v1803_v29  ;;  %v360_v59 = vpop.permute.xlu0 %359  ;;  %v395_v24 = vperm.slane %v375_v21, %v1803_v29 }
 0x279   :  { %v390_v62 = vperm.slane %v360_v59, %v1803_v29 }
 0x27a   :  { %v410_v55 = vsel %vm2375_vm5, %v388_v51, %v408_v54 }
 0x27b   :  { %v421_v57 = vsel %vm2374_vm6, %v410_v55, -inf  ;;  %v411_v3 = vsel %vm397_vm11, %v390_v62, %v389_v0 }
 0x27c   :  { %422 = vmax.xlane.f32.xlu1 %v421_v57 }
 0x27f   :  { %v363_v60 = vpop.permute.xlu1 %362 }
 0x280   :  { %v391_v63 = vperm.slane %v363_v60, %v1803_v29 }
 0x282   :  { %v412_v9 = vsel %vm399_vm12, %v391_v63, %v411_v3 }
 0x283   :  { %v413_v16 = vsel %vm401_vm14, %v392_v15, %v412_v9 }
 0x287   :  { %v369_v8 = vpop.permute.xlu0 %368 }
 0x288   :  { %v393_v12 = vperm.slane %v369_v8, %v1803_v29  ;;  %v372_v13 = vpop.permute.xlu1 %371 }
 0x289   :  { %v394_v18 = vperm.slane %v372_v13, %v1803_v29 }
 0x28a   :  { %v414_v19 = vsel %vm403_vm15, %v393_v12, %v413_v16 }
 0x28b   :  { %v415_v22 = vsel %vm2377_vm3, %v394_v18, %v414_v19 }
 0x28c   :  { %v416_v28 = vsel %vm2376_vm4, %v395_v24, %v415_v22 }
 0x290   :  { %v378_v26 = vpop.permute.xlu0 %377 }
 0x291   :  { %v396_v27 = vperm.slane %v378_v26, %v1803_v29 }
 0x293   :  { %v417_v30 = vsel %vm2375_vm5, %v396_v27, %v416_v28 }
 0x294   :  { %v424_v31 = vsel %vm2374_vm6, %v417_v30, -inf }
 0x295   :  { %425 = vmax.xlane.f32.xlu2 %v424_v31 }
 0x2ef   :  { %v1837_v32 = vpop.xlane.xlu1 %422 }
 0x2f0   :  { %v435_v33 = vperm.slane %v1837_v32, 6  ;;  %v434_v34 = vperm.slane %v1837_v32, 5  ;;  %v429_v36 = vperm.slane %v1837_v32, 0  ;;  %v430_v10 = vperm.slane %v1837_v32, 1 }
 0x2f1   :  { %v431_v51 = vperm.slane %v1837_v32, 2  ;;  %v433_v62 = vperm.slane %v1837_v32, 4  ;;  %v436_v18 = vperm.slane %v1837_v32, 7 }
 0x2f2   :  { %v467_v38 = vsub.f32 %v1753_v61, %v435_v33  ;;  %v466_v39 = vsub.f32 %v1749_v58, %v434_v34  ;;  %v461_v41 = vsub.f32 %v1730_v47, %v429_v36  ;;  %v462_v46 = vsub.f32 %v1721_v40, %v430_v10 }
 0x2f3   :  { %v463_v58 = vsub.f32 %v1726_v44, %v431_v51  ;;  %v432_v40 = vperm.slane %v1837_v32, 3 }
 0x2f4   :  { %v489_v42 = vmul.f32 1.442695, %v467_v38  ;;  %v487_v43 = vmul.f32 1.442695, %v466_v39  ;;  %v477_v45 = vmul.f32 1.442695, %v461_v41 }
 0x2f5   :  { %v479_v49 = vmul.f32 1.442695, %v462_v46  ;;  %v481_v52 = vmul.f32 1.442695, %v463_v58  ;;  %v464_v55 = vsub.f32 %v1736_v50, %v432_v40  ;;  %v465_v50 = vsub.f32 %v1741_v53, %v433_v62 }
 0x2f6   :  { %1558 = vpow2.f32 %v489_v42  ;;  %v468_v53 = vsub.f32 %v1761_v1, %v436_v18 }
 0x2f7   :  { %1560 = vpow2.f32 %v487_v43  ;;  %v483_v60 = vmul.f32 1.442695, %v464_v55 }
 0x2f8   :  { %1562 = vpow2.f32 %v477_v45 }
 0x2f9   :  { %1564 = vpow2.f32 %v479_v49 }
 0x2fa   :  { %1566 = vpow2.f32 %v481_v52 }
 0x2fb   :  { %1568 = vpow2.f32 %v483_v60 }
 0x2fc   :  { %v1847_v48 = vpop.eup %1558 }
 0x2fd   :  { %v1850_v61 = vpop.eup %1560  ;;  %544 = vperm.xlu1 %1553, %v1847_v48  }
 0x2fe   :  { %v1853_v47 = vpop.eup %1562  ;;  %541 = vperm.xlu2 %1551, %v1850_v61  }
 0x2ff   :  { %526 = vperm.xlu0 %1552, %v1853_v47   ;;  %v1859_v54 = vpop.eup %1564 }
 0x300   :  { %v1866_v9 = vpop.eup %1566 }
 0x307   :  { %529 = vperm.xlu0 %1552, %v1859_v54  }
 0x308   :  { %v426_v56 = vpop.xlane.xlu2 %425 }
 0x309   :  { %v440_v57 = vperm.slane %v426_v56, 3  ;;  %v439_v59 = vperm.slane %v426_v56, 2  ;;  %v443_v0 = vperm.slane %v426_v56, 6  ;;  %v442_v2 = vperm.slane %v426_v56, 5 }
 0x30a   :  { %v437_v22 = vperm.slane %v426_v56, 0  ;;  %v438_v30 = vperm.slane %v426_v56, 1  ;;  %v441_v33 = vperm.slane %v426_v56, 4 }
 0x30b   :  { %v472_v63 = vsub.f32 %v1778_v14, %v440_v57  ;;  %v471_v44 = vsub.f32 %v1774_v11, %v439_v59  ;;  %v475_v12 = vsub.f32 %v1794_v23, %v443_v0  ;;  %v474_v13 = vsub.f32 %v1788_v20, %v442_v2  ;;  %v1872_v11 = vpop.eup %1568 }
 0x30c   :  { %v485_v14 = vmul.f32 1.442695, %v465_v50  ;;  %v491_v23 = vmul.f32 1.442695, %v468_v53  ;;  %v469_v27 = vsub.f32 %v1767_v6, %v437_v22  ;;  %v470_v31 = vsub.f32 %v1765_v4, %v438_v30 }
 0x30d   :  { %v499_v3 = vmul.f32 1.442695, %v472_v63  ;;  %v497_v8 = vmul.f32 1.442695, %v471_v44  ;;  %v505_v15 = vmul.f32 1.442695, %v475_v12  ;;  %v473_v36 = vsub.f32 %v1784_v17, %v441_v33 }
 0x30e   :  { %v503_v16 = vmul.f32 1.442695, %v474_v13  ;;  %v493_v28 = vmul.f32 1.442695, %v469_v27  ;;  %v495_v32 = vmul.f32 1.442695, %v470_v31 }
 0x30f   :  { %532 = vperm.xlu0 %1552, %v1866_v9   ;;  %1570 = vpow2.f32 %v499_v3  ;;  %v501_v38 = vmul.f32 1.442695, %v473_v36  ;;  %v444_v6 = vperm.slane %v426_v56, 7 }
 0x310   :  { %1572 = vpow2.f32 %v497_v8 }
 0x311   :  { %1574 = vpow2.f32 %v485_v14  ;;  %v476_v41 = vsub.f32 %v1798_v25, %v444_v6 }
 0x312   :  { %1576 = vpow2.f32 %v505_v15 }
 0x313   :  { %1578 = vpow2.f32 %v503_v16  ;;  %v507_v10 = vmul.f32 1.442695, %v476_v41 }
 0x314   :  { %1580 = vpow2.f32 %v491_v23 }
 0x315   :  { %v1875_v19 = vpop.eup %1570  ;;  %1582 = vpow2.f32 %v493_v28 }
 0x316   :  { %v1877_v21 = vpop.eup %1572  ;;  %559 = vperm.xlu1 %1553, %v1875_v19   ;;  %1584 = vpow2.f32 %v495_v32 }
 0x317   :  { %556 = vperm.xlu2 %1551, %v1877_v21   ;;  %535 = vperm.xlu0 %1552, %v1872_v11   ;;  %v1883_v20 = vpop.eup %1574  ;;  %1586 = vpow2.f32 %v501_v38 }
 0x318   :  { %v1885_v24 = vpop.eup %1576  ;;  %1588 = vpow2.f32 %v507_v10 }
 0x319   :  { %v1887_v26 = vpop.eup %1578 }
 0x31a   :  { %v1893_v1 = vpop.eup %1580 }
 0x31b   :  { %v1897_v34 = vpop.eup %1582 }
 0x31c   :  { %v1901_v39 = vpop.eup %1584 }
 0x31d   :  { %v1905_v4 = vpop.eup %1586 }
 0x31e   :  { %568 = vperm.xlu1 %1553, %v1885_v24   ;;  %v1908_v42 = vpop.eup %1588 }
 0x31f   :  { %565 = vperm.xlu2 %1551, %v1887_v26   ;;  %538 = vperm.xlu0 %1552, %v1883_v20  }
 0x327   :  { %547 = vperm.xlu0 %1552, %v1893_v1  }
 0x32f   :  { %550 = vperm.xlu0 %1552, %v1897_v34  }
 0x337   :  { %553 = vperm.xlu0 %1552, %v1901_v39  }
 0x33f   :  { %562 = vperm.xlu0 %1552, %v1905_v4  }
 0x347   :  { %571 = vperm.xlu0 %1552, %v1908_v42  }
 0x34f   :  { %932 = vrot.lane.b32.xlu0 %v1697_v5, %s1654_s0 }
 0x358   :  { %v542_v56 = vpop.permute.xlu2 %541 }
 0x359   :  { %v578_v60 = vperm.slane %v542_v56, %v1803_v29 }
 0x36f   :  { %v545_v62 = vpop.permute.xlu1 %544 }
 0x370   :  { %v579_v44 = vperm.slane %v545_v62, %v1803_v29 }
 0x371   :  { %v527_v17 = vpop.permute.xlu0 %526  ;;  %v557_v13 = vpop.permute.xlu2 %556 }
 0x372   :  { %v573_v51 = vperm.slane %v527_v17, %v1803_v29  ;;  %v583_v23 = vperm.slane %v557_v13, %v1803_v29 }
 0x379   :  { %v530_v43 = vpop.permute.xlu0 %529  ;;  %v566_v31 = vpop.permute.xlu2 %565 }
 0x37a   :  { %v574_v25 = vperm.slane %v530_v43, %v1803_v29  ;;  %v586_v36 = vperm.slane %v566_v31, %v1803_v29 }
 0x37c   :  { %v589_v52 = vsel %vm397_vm11, %v574_v25, %v573_v51 }
 0x381   :  { %v533_v45 = vpop.permute.xlu0 %532 }
 0x382   :  { %v575_v49 = vperm.slane %v533_v45, %v1803_v29 }
 0x384   :  { %v590_v5 = vsel %vm399_vm12, %v575_v49, %v589_v52 }
 0x388   :  { %v560_v16 = vpop.permute.xlu1 %559 }
 0x389   :  { %v536_v46 = vpop.permute.xlu0 %535  ;;  %v584_v28 = vperm.slane %v560_v16, %v1803_v29 }
 0x38a   :  { %v576_v58 = vperm.slane %v536_v46, %v1803_v29 }
 0x38c   :  { %v591_v57 = vsel %vm401_vm14, %v576_v58, %v590_v5 }
 0x390   :  { %v569_v38 = vpop.permute.xlu1 %568 }
 0x391   :  { %v539_v40 = vpop.permute.xlu0 %538  ;;  %v587_v41 = vperm.slane %v569_v38, %v1803_v29 }
 0x392   :  { %v577_v55 = vperm.slane %v539_v40, %v1803_v29 }
 0x394   :  { %v592_v59 = vsel %vm403_vm15, %v577_v55, %v591_v57 }
 0x395   :  { %v593_v63 = vsel %vm2377_vm3, %v578_v60, %v592_v59 }
 0x396   :  { %v594_v3 = vsel %vm2376_vm4, %v579_v44, %v593_v63 }
 0x399   :  { %v548_v0 = vpop.permute.xlu0 %547 }
 0x39a   :  { %v580_v2 = vperm.slane %v548_v0, %v1803_v29 }
 0x39c   :  { %v595_v8 = vsel %vm2375_vm5, %v580_v2, %v594_v3 }
 0x39d   :  { %v605_v50 = vsel %vm2374_vm6, %v595_v8, 0.0 }
 0x39e   :  { %606 = vadd.xlane.f32.xlu2 %v605_v50 }
 0x3a1   :  { %v551_v12 = vpop.permute.xlu0 %550 }
 0x3a2   :  { %v581_v18 = vperm.slane %v551_v12, %v1803_v29 }
 0x3a9   :  { %v554_v14 = vpop.permute.xlu0 %553 }
 0x3aa   :  { %v582_v15 = vperm.slane %v554_v14, %v1803_v29 }
 0x3ac   :  { %v596_v53 = vsel %vm397_vm11, %v582_v15, %v581_v18 }
 0x3ad   :  { %v597_v22 = vsel %vm399_vm12, %v583_v23, %v596_v53 }
 0x3ae   :  { %v598_v32 = vsel %vm401_vm14, %v584_v28, %v597_v22 }
 0x3b1   :  { %v563_v27 = vpop.permute.xlu0 %562 }
 0x3b2   :  { %v585_v30 = vperm.slane %v563_v27, %v1803_v29 }
 0x3b4   :  { %v599_v33 = vsel %vm403_vm15, %v585_v30, %v598_v32 }
 0x3b5   :  { %v600_v6 = vsel %vm2377_vm3, %v586_v36, %v599_v33 }
 0x3b6   :  { %v601_v43 = vsel %vm2376_vm4, %v587_v41, %v600_v6 }
 0x3b9   :  { %v572_v10 = vpop.permute.xlu0 %571 }
 0x3ba   :  { %v588_v17 = vperm.slane %v572_v10, %v1803_v29 }
 0x3bc   :  { %v602_v45 = vsel %vm2375_vm5, %v588_v17, %v601_v43 }
 0x3bd   :  { %v608_v46 = vsel %vm2374_vm6, %v602_v45, 0.0 }
 0x3be   :  { %609 = vadd.xlane.f32.xlu1 %v608_v46 }
 0x3c1   :  { %v933_v25 = vpop.permute.xlu0 %932 }
 0x3c2   :  { %952 = vmatpush.msra.mxu3 %v933_v25 }
 0x411   :  { %v607_v49 = vpop.xlane.xlu2 %606 }
 0x412   :  { %v613_v51 = vperm.slane %v607_v49, 0  ;;  %v1945_v58 = vperm.slane %v607_v49, 1  ;;  %v1947_v40 = vperm.slane %v607_v49, 2  ;;  %v1949_v52 = vperm.slane %v607_v49, 3 }
 0x413   :  { %v1951_v55 = vperm.slane %v607_v49, 5  ;;  %v1954_v56 = vperm.slane %v607_v49, 6  ;;  %v1959_v57 = vperm.slane %v607_v49, 4  ;;  %v1966_v0 = vperm.slane %v607_v49, 7 }
 0x414   :  { %1590 = vrcp.f32 %v613_v51  ;;  %v654_v59 = vand.u32 2147483647, %v613_v51  ;;  %v656_v60 = vand.u32 2147483648, %v613_v51  ;;  %vm650_vm7 = vweird.f32 %v613_v51 }
 0x415   :  { %1592 = vrcp.f32 %v1945_v58  ;;  %v729_v2 = vand.u32 2147483647, %v1951_v55  ;;  %v731_v50 = vand.u32 2147483648, %v1951_v55  ;;  %vm725_vm8 = vweird.f32 %v1951_v55 }
 0x416   :  { %1594 = vrcp.f32 %v1947_v40  ;;  %vm1978_vm9 = vcmp.eq.f32.partialorder %v654_v59, 8.507059e+37  ;;  %v657_v15 = vor.u32 1.1754944e-38, %v656_v60  ;;  %vm740_vm13 = vweird.f32 %v1954_v56 }
 0x417   :  { %1596 = vrcp.f32 %v1949_v52  ;;  %v744_v23 = vand.u32 2147483647, %v1954_v56  ;;  %vm1985_vm1 = vcmp.eq.f32.partialorder %v729_v2, 8.507059e+37  ;;  %v746_v30 = vand.u32 2147483648, %v1954_v56 }
 0x418   :  { %1598 = vrcp.f32 %v1951_v55  ;;  %vm665_vm2 = vweird.f32 %v1945_v58  ;;  %v669_v41 = vand.u32 2147483647, %v1945_v58  ;;  %v671_v10 = vand.u32 2147483648, %v1945_v58 }
 0x419   :  { %1600 = vrcp.f32 %v1954_v56  ;;  %v732_v2 = vor.u32 1.1754944e-38, %v731_v50 }
 0x41a   :  { %v1591_v5 = vpop.eup %1590  ;;  %1602 = vrcp.f32 %v1959_v57  ;;  %vm670_vm3 = vcmp.eq.f32.partialorder %v669_v41, 8.507059e+37 }
 0x41b   :  { %v1962_v62 = vpop.eup %1592  ;;  %v646_v63 = vmul.f32 %v1591_v5, %v613_v51  ;;  %vm651_vm10 = vweird.f32 %v1591_v5  ;;  %1604 = vrcp.f32 %v1966_v0 }
 0x41c   :  { %v1964_v44 = vpop.eup %1594  ;;  %v661_v3 = vmul.f32 %v1962_v62, %v1945_v58  ;;  %vm652_vm6 = vmor %vm650_vm7, %vm651_vm10  ;;  %vm666_vm5 = vweird.f32 %v1962_v62 }
 0x41d   :  { %v1971_v8 = vpop.eup %1596  ;;  %v647_v12 = vsub.f32 1.0, %v646_v63  ;;  %v676_v13 = vmul.f32 %v1964_v44, %v1947_v40  ;;  %vm2014_vm10 = vmor %vm665_vm2, %vm666_vm5 }
 0x41e   :  { %v662_v16 = vsub.f32 1.0, %v661_v3  ;;  %v1599_v18 = vpop.eup %1598  ;;  %v691_v32 = vmul.f32 %v1971_v8, %v1949_v52  ;;  %vm696_vm5 = vweird.f32 %v1971_v8 }
 0x41f   :  { %v648_v53 = vmul.f32 %v1591_v5, %v647_v12  ;;  %v1601_v22 = vpop.eup %1600  ;;  %v721_v27 = vmul.f32 %v1599_v18, %v1951_v55  ;;  %v677_v38 = vsub.f32 1.0, %v676_v13  ;;  %vm726_vm4 = vweird.f32 %v1599_v18 }
 0x420   :  { %v663_v31 = vmul.f32 %v1962_v62, %v662_v16  ;;  %v736_v36 = vmul.f32 %v1601_v22, %v1954_v56  ;;  %v2002_v46 = vpop.eup %1602  ;;  %v692_v59 = vsub.f32 1.0, %v691_v32  ;;  %vm741_vm7 = vweird.f32 %v1601_v22 }
 0x421   :  { %v649_v33 = vadd.f32 %v1591_v5, %v648_v53  ;;  %v722_v6 = vsub.f32 1.0, %v721_v27  ;;  %v678_v63 = vmul.f32 %v1964_v44, %v677_v38  ;;  %v747_v12 = vor.u32 1.1754944e-38, %v746_v30  ;;  %vm742_vm2 = vmor %vm740_vm13, %vm741_vm7 }
 0x422   :  { %v737_v43 = vsub.f32 1.0, %v736_v36  ;;  %v664_v45 = vadd.f32 %v1962_v62, %v663_v31  ;;  %v706_v14 = vmul.f32 %v2002_v46, %v1959_v57  ;;  %v672_v16 = vor.u32 1.1754944e-38, %v671_v10 }
 0x423   :  { %v653_v17 = vsel %vm652_vm6, %v1591_v5, %v649_v33  ;;  %v723_v25 = vmul.f32 %v1599_v18, %v722_v6  ;;  %vm2008_vm6 = vcmp.eq.f32.partialorder %v744_v23, 8.507059e+37  ;;  %v693_v55 = vmul.f32 %v1971_v8, %v692_v59 }
 0x424   :  { %v658_v49 = vsel %vm1978_vm9, %v657_v15, %v653_v17  ;;  %v738_v60 = vmul.f32 %v1601_v22, %v737_v43  ;;  %vm727_vm9 = vmor %vm725_vm8, %vm726_vm4  ;;  %v668_v50 = vsel %vm2014_vm10, %v1962_v62, %v664_v45  ;;  %v2025_v15 = vpop.eup %1604  ;;  %vm681_vm4 = vweird.f32 %v1964_v44 }
 0x425   :  { %v659_v51 = vmul.f32 %v1853_v47, %v658_v49  ;;  %v724_v5 = vadd.f32 %v1599_v18, %v723_v25  ;;  %v679_v23 = vadd.f32 %v1964_v44, %v678_v63  ;;  %v707_v27 = vsub.f32 1.0, %v706_v14 }
 0x426   :  { %v739_v47 = vadd.f32 %v1601_v22, %v738_v60  ;;  %v673_v31 = vsel %vm670_vm3, %v672_v16, %v668_v50  ;;  %v686_v56 = vand.u32 2147483648, %v1947_v40  ;;  %vm680_vm13 = vweird.f32 %v1947_v40 }
 0x427   :  { %894 = vperm.xlu0 %1552, %v659_v51   ;;  %v728_v58 = vsel %vm727_vm9, %v1599_v18, %v724_v5  ;;  %v684_v33 = vand.u32 2147483647, %v1947_v40  ;;  %v674_v28 = vmul.f32 %v1859_v54, %v673_v31  ;;  %v708_v38 = vmul.f32 %v2002_v46, %v707_v27 }
 0x428   :  { %v733_v53 = vsel %vm1985_vm1, %v732_v2, %v728_v58  ;;  %v743_v62 = vsel %vm742_vm2, %v1601_v22, %v739_v47  ;;  %vm682_vm1 = vmor %vm680_vm13, %vm681_vm4  ;;  %v694_v22 = vadd.f32 %v1971_v8, %v693_v55  ;;  %v687_v6 = vor.u32 1.1754944e-38, %v686_v56 }
 0x429   :  { %v734_v30 = vmul.f32 %v1850_v61, %v733_v53  ;;  %v748_v18 = vsel %vm2008_vm6, %v747_v12, %v743_v62  ;;  %v701_v61 = vand.u32 2147483648, %v1949_v52  ;;  %v683_v36 = vsel %vm682_vm1, %v1964_v44, %v679_v23 }
 0x42a   :  { %v749_v32 = vmul.f32 %v1847_v48, %v748_v18  ;;  %v751_v48 = vmul.f32 %v2025_v15, %v1966_v0  ;;  %vm685_vm3 = vcmp.eq.f32.partialorder %v684_v33, 8.507059e+37  ;;  %vm695_vm8 = vweird.f32 %v1949_v52 }
 0x42b   :  { %909 = vperm.xlu2 %1551, %v734_v30   ;;  %v699_v40 = vand.u32 2147483647, %v1949_v52  ;;  %v688_v41 = vsel %vm685_vm3, %v687_v6, %v683_v36  ;;  %vm2052_vm7 = vmor %vm695_vm8, %vm696_vm5  ;;  %v702_v54 = vor.u32 1.1754944e-38, %v701_v61  ;;  %v709_v43 = vadd.f32 %v2002_v46, %v708_v38 }
 0x42c   :  { %912 = vperm.xlu1 %1553, %v749_v32   ;;  %v698_v44 = vsel %vm2052_vm7, %v1971_v8, %v694_v22  ;;  %vm711_vm6 = vweird.f32 %v2002_v46  ;;  %v752_v45 = vsub.f32 1.0, %v751_v48  ;;  %v716_v59 = vand.u32 2147483648, %v1959_v57 }
 0x42d   :  { %vm700_vm10 = vcmp.eq.f32.partialorder %v699_v40, 8.507059e+37  ;;  %vm710_vm9 = vweird.f32 %v1959_v57  ;;  %v714_v51 = vand.u32 2147483647, %v1959_v57  ;;  %v689_v8 = vmul.f32 %v1866_v9, %v688_v41 }
 0x42e   :  { %v703_v63 = vsel %vm700_vm10, %v702_v54, %v698_v44  ;;  %vm712_vm2 = vmor %vm710_vm9, %vm711_vm6  ;;  %v753_v3 = vmul.f32 %v2025_v15, %v752_v45  ;;  %v717_v12 = vor.u32 1.1754944e-38, %v716_v59  ;;  %vm756_vm13 = vweird.f32 %v2025_v15 }
 0x42f   :  { %897 = vperm.xlu0 %1552, %v674_v28   ;;  %v713_v2 = vsel %vm712_vm2, %v2002_v46, %v709_v43  ;;  %vm715_vm4 = vcmp.eq.f32.partialorder %v714_v51, 8.507059e+37  ;;  %v704_v9 = vmul.f32 %v1872_v11, %v703_v63  ;;  %vm755_vm1 = vweird.f32 %v1966_v0 }
 0x430   :  { %v718_v13 = vsel %vm715_vm4, %v717_v12, %v713_v2  ;;  %v2089_v50 = vadd.f32 %v2025_v15, %v753_v3  ;;  %v759_v62 = vand.u32 2147483647, %v1966_v0  ;;  %v761_v23 = vand.u32 2147483648, %v1966_v0  ;;  %vm2109_vm8 = vmor %vm755_vm1, %vm756_vm13 }
 0x431   :  { %v610_v17 = vpop.xlane.xlu1 %609  ;;  %v719_v53 = vmul.f32 %v1883_v20, %v718_v13 }
 0x432   :  { %v2061_v25 = vperm.slane %v610_v17, 0  ;;  %v2063_v49 = vperm.slane %v610_v17, 1  ;;  %v2065_v52 = vperm.slane %v610_v17, 2  ;;  %v2070_v60 = vperm.slane %v610_v17, 4 }
 0x433   :  { %v2074_v5 = vperm.slane %v610_v17, 5  ;;  %v2080_v57 = vperm.slane %v610_v17, 7  ;;  %v2093_v58 = vperm.slane %v610_v17, 3  ;;  %v2102_v30 = vperm.slane %v610_v17, 6 }
 0x434   :  { %1606 = vrcp.f32 %v2061_v25  ;;  %v804_v46 = vand.u32 2147483647, %v2065_v52  ;;  %v806_v47 = vand.u32 2147483648, %v2065_v52  ;;  %v789_v16 = vand.u32 2147483647, %v2063_v49 }
 0x435   :  { %1608 = vrcp.f32 %v2063_v49  ;;  %v791_v11 = vand.u32 2147483648, %v2063_v49  ;;  %vm800_vm5 = vweird.f32 %v2065_v52  ;;  %vm785_vm3 = vweird.f32 %v2063_v49 }
 0x436   :  { %1610 = vrcp.f32 %v2065_v52  ;;  %vm2114_vm7 = vcmp.eq.f32.partialorder %v804_v46, 8.507059e+37  ;;  %v807_v32 = vor.u32 1.1754944e-38, %v806_v47  ;;  %v758_v33 = vsel %vm2109_vm8, %v2025_v15, %v2089_v50 }
 0x437   :  { %900 = vperm.xlu0 %1552, %v689_v8   ;;  %1612 = vrcp.f32 %v2070_v60  ;;  %vm2125_vm6 = vcmp.eq.f32.partialorder %v789_v16, 8.507059e+37  ;;  %v792_v36 = vor.u32 1.1754944e-38, %v791_v11  ;;  %v849_v6 = vand.u32 2147483647, %v2074_v5 }
 0x438   :  { %1614 = vrcp.f32 %v2074_v5  ;;  %v851_v54 = vand.u32 2147483648, %v2074_v5  ;;  %vm830_vm2 = vweird.f32 %v2070_v60  ;;  %v834_v51 = vand.u32 2147483647, %v2070_v60 }
 0x439   :  { %1616 = vrcp.f32 %v2080_v57  ;;  %v836_v3 = vand.u32 2147483648, %v2070_v60 }
 0x43a   :  { %v2091_v14 = vpop.eup %1606  ;;  %1618 = vrcp.f32 %v2093_v58 }
 0x43b   :  { %v1609_v55 = vpop.eup %1608  ;;  %v766_v15 = vmul.f32 %v2091_v14, %v2061_v25  ;;  %1620 = vrcp.f32 %v2102_v30 }
 0x43c   :  { %v1611_v27 = vpop.eup %1610  ;;  %v781_v18 = vmul.f32 %v1609_v55, %v2063_v49  ;;  %vm786_vm10 = vweird.f32 %v1609_v55 }
 0x43d   :  { %v796_v20 = vmul.f32 %v1611_v27, %v2065_v52  ;;  %v2122_v22 = vpop.eup %1612  ;;  %vm801_vm9 = vweird.f32 %v1611_v27  ;;  %vm787_vm4 = vmor %vm785_vm3, %vm786_vm10  ;;  %v767_v12 = vsub.f32 1.0, %v766_v15  ;;  %vm850_vm10 = vcmp.eq.f32.partialorder %v849_v6, 8.507059e+37 }
 0x43e   :  { %v782_v61 = vsub.f32 1.0, %v781_v18  ;;  %v2129_v38 = vpop.eup %1614  ;;  %v826_v40 = vmul.f32 %v2122_v22, %v2070_v60  ;;  %vm802_vm13 = vmor %vm800_vm5, %vm801_vm9  ;;  %vm831_vm1 = vweird.f32 %v2122_v22  ;;  %vm845_vm5 = vweird.f32 %v2074_v5 }
 0x43f   :  { %903 = vperm.xlu0 %1552, %v704_v9   ;;  %v797_v48 = vsub.f32 1.0, %v796_v20  ;;  %v841_v10 = vmul.f32 %v2129_v38, %v2074_v5  ;;  %v2139_v17 = vpop.eup %1616  ;;  %vm846_vm3 = vweird.f32 %v2129_v38  ;;  %vm2168_vm8 = vmor %vm830_vm2, %vm831_vm1  ;;  %v768_v31 = vmul.f32 %v2091_v14, %v767_v12 }
 0x440   :  { %v783_v41 = vmul.f32 %v1609_v55, %v782_v61  ;;  %v827_v43 = vsub.f32 1.0, %v826_v40  ;;  %v871_v8 = vmul.f32 %v2139_v17, %v2080_v57  ;;  %v2149_v9 = vpop.eup %1618  ;;  %vm835_vm9 = vcmp.eq.f32.partialorder %v834_v51, 8.507059e+37 }
 0x441   :  { %v798_v44 = vmul.f32 %v1611_v27, %v797_v48  ;;  %v842_v59 = vsub.f32 1.0, %v841_v10  ;;  %v811_v20 = vmul.f32 %v2149_v9, %v2093_v58  ;;  %v769_v28 = vadd.f32 %v2091_v14, %v768_v31 }
 0x442   :  { %v784_v45 = vadd.f32 %v1609_v55, %v783_v41  ;;  %v828_v2 = vmul.f32 %v2122_v22, %v827_v43  ;;  %v872_v47 = vsub.f32 1.0, %v871_v8  ;;  %vm771_vm2 = vweird.f32 %v2091_v14 }
 0x443   :  { %v799_v63 = vadd.f32 %v1611_v27, %v798_v44  ;;  %v843_v46 = vmul.f32 %v2129_v38, %v842_v59  ;;  %v774_v6 = vand.u32 2147483647, %v2061_v25  ;;  %vm875_vm1 = vweird.f32 %v2080_v57 }
 0x444   :  { %v788_v13 = vsel %vm787_vm4, %v1609_v55, %v784_v45  ;;  %v829_v16 = vadd.f32 %v2122_v22, %v828_v2  ;;  %v873_v60 = vmul.f32 %v2139_v17, %v872_v47  ;;  %vm876_vm4 = vweird.f32 %v2139_v17 }
 0x445   :  { %v803_v50 = vsel %vm802_vm13, %v1611_v27, %v799_v63  ;;  %v793_v49 = vsel %vm2125_vm6, %v792_v36, %v788_v13  ;;  %v844_v55 = vadd.f32 %v2129_v38, %v843_v46  ;;  %vm760_vm6 = vcmp.eq.f32.partialorder %v759_v62, 8.507059e+37  ;;  %v1621_v36 = vpop.eup %1620 }
 0x446   :  { %v808_v52 = vsel %vm2114_vm7, %v807_v32, %v803_v50  ;;  %v794_v11 = vmul.f32 %v1901_v39, %v793_v49  ;;  %v762_v39 = vor.u32 1.1754944e-38, %v761_v23  ;;  %vm2175_vm7 = vmor %vm845_vm5, %vm846_vm3  ;;  %v852_v32 = vor.u32 1.1754944e-38, %v851_v54 }
 0x447   :  { %906 = vperm.xlu0 %1552, %v719_v53   ;;  %v809_v18 = vmul.f32 %v1877_v21, %v808_v52  ;;  %v833_v21 = vsel %vm2168_vm8, %v2122_v22, %v829_v16  ;;  %v848_v5 = vsel %vm2175_vm7, %v2129_v38, %v844_v55  ;;  %v837_v53 = vor.u32 1.1754944e-38, %v836_v3  ;;  %vm877_vm5 = vmor %vm875_vm1, %vm876_vm4 }
 0x448   :  { %969 = vperm.xlu2 %1551, %v794_v11   ;;  %v763_v23 = vsel %vm760_vm6, %v762_v39, %v758_v33  ;;  %v812_v22 = vsub.f32 1.0, %v811_v20  ;;  %v853_v48 = vsel %vm850_vm10, %v852_v32, %v848_v5  ;;  %v874_v0 = vadd.f32 %v2139_v17, %v873_v60  ;;  %v1031_v5 = vld [vmem:[%s2369_s1 + $0x6] sm:$0x1f] }
 0x449   :  { %972 = vperm.xlu1 %1553, %v809_v18   ;;  %v838_v61 = vsel %vm835_vm9, %v837_v53, %v833_v21  ;;  %v776_v62 = vand.u32 2147483648, %v2061_v25  ;;  %v764_v38 = vmul.f32 %v1893_v1, %v763_v23  ;;  %v881_v33 = vand.u32 2147483648, %v2080_v57  ;;  %1524 = vmatpush.msk.msrb.mxu1 %vm34_vm0, %v1031_v5 }
 0x44a   :  { %vm770_vm13 = vweird.f32 %v2061_v25  ;;  %v839_v40 = vmul.f32 %v1905_v4, %v838_v61  ;;  %v879_v15 = vand.u32 2147483647, %v2080_v57  ;;  %v854_v41 = vmul.f32 %v1887_v26, %v853_v48 }
 0x44b   :  { %vm772_vm3 = vmor %vm770_vm13, %vm771_vm2  ;;  %v813_v1 = vmul.f32 %v2149_v9, %v812_v22  ;;  %v856_v54 = vmul.f32 %v1621_v36, %v2102_v30  ;;  %v878_v25 = vsel %vm877_vm5, %v2139_v17, %v874_v0  ;;  %v777_v44 = vor.u32 1.1754944e-38, %v776_v62 }
 0x44c   :  { %v773_v10 = vsel %vm772_vm3, %v2091_v14, %v769_v28  ;;  %v882_v4 = vor.u32 1.1754944e-38, %v881_v33  ;;  %vm775_vm8 = vcmp.eq.f32.partialorder %v774_v6, 8.507059e+37  ;;  %vm880_vm7 = vcmp.eq.f32.partialorder %v879_v15, 8.507059e+37 }
 0x44d   :  { %v778_v57 = vsel %vm775_vm8, %v777_v44, %v773_v10  ;;  %v814_v45 = vadd.f32 %v2149_v9, %v813_v1  ;;  %vm816_vm6 = vweird.f32 %v2149_v9  ;;  %v857_v26 = vsub.f32 1.0, %v856_v54 }
 0x44e   :  { %v883_v43 = vsel %vm880_vm7, %v882_v4, %v878_v25  ;;  %v821_v14 = vand.u32 2147483648, %v2093_v58  ;;  %v779_v59 = vmul.f32 %v1897_v34, %v778_v57  ;;  %vm815_vm10 = vweird.f32 %v2093_v58 }
 0x44f   :  { %915 = vperm.xlu0 %1552, %v764_v38   ;;  %v819_v17 = vand.u32 2147483647, %v2093_v58  ;;  %v884_v51 = vmul.f32 %v1908_v42, %v883_v43  ;;  %vm817_vm9 = vmor %vm815_vm10, %vm816_vm6  ;;  %v858_v63 = vmul.f32 %v1621_v36, %v857_v26  ;;  %vm861_vm4 = vweird.f32 %v1621_v36 }
 0x450   :  { %978 = vperm.xlu2 %1551, %v839_v40   ;;  %v818_v8 = vsel %vm817_vm9, %v2149_v9, %v814_v45  ;;  %v822_v2 = vor.u32 1.1754944e-38, %v821_v14  ;;  %v866_v34 = vand.u32 2147483648, %v2102_v30  ;;  %vm860_vm13 = vweird.f32 %v2102_v30 }
 0x451   :  { %981 = vperm.xlu1 %1553, %v854_v41   ;;  %vm820_vm2 = vcmp.eq.f32.partialorder %v819_v17, 8.507059e+37  ;;  %v859_v12 = vadd.f32 %v1621_v36, %v858_v63  ;;  %v864_v42 = vand.u32 2147483647, %v2102_v30  ;;  %vm862_vm1 = vmor %vm860_vm13, %vm861_vm4  ;;  %vm2398_vm5 = vcmask 1045509  }
 0x452   :  { %v823_v3 = vsel %vm820_vm2, %v822_v2, %v818_v8  ;;  %v867_v13 = vor.u32 1.1754944e-38, %v866_v34  ;;  %vm2399_vm8 = vcmask 1046534   ;;  %vm2400_vm7 = vcmask 1047559  }
 0x453   :  { %v824_v58 = vmul.f32 %v1875_v19, %v823_v3  ;;  %v863_v9 = vsel %vm862_vm1, %v1621_v36, %v859_v12  ;;  %vm865_vm3 = vcmp.eq.f32.partialorder %v864_v42, 8.507059e+37  ;;  %vm2401_vm6 = vcmask 64512   ;;  %vm2403_vm10 = vmmov %vm2399_vm8 }
 0x454   :  { %v868_v46 = vsel %vm865_vm3, %v867_v13, %v863_v9  ;;  %vm2404_vm9 = vmmov %vm2400_vm7  ;;  %vm2408_vm4 = vcmp.eq.f32.partialorder %v1717_v37, 0.0  ;;  %v1095_v37 = vld [vmem:[%s2369_s1 + $0x14] sm:$0x3]  ;;  %vm1126_vm1 = vcmask 1041408  }
 0x455   :  { %vm2405_vm2 = vmmov %vm2401_vm6  ;;  %1527 = vmatpush.msk.msrb.mxu2 %vm1126_vm1, %v1095_v37  ;;  %vm1337_vm1 = vcmask 648192  }
 0x457   :  { %966 = vperm.xlu0 %1552, %v779_v59  }
 0x458   :  { %987 = vperm.xlu2 %1551, %v884_v51  }
 0x459   :  { %1004 = vrot.lane.b32.xlu1 %v1700_v7, %s1654_s0  ;;  %v869_v7 = vmul.f32 %v1885_v24, %v868_v46  ;;  %v1094_v46 = vld [vmem:[%s2369_s1 + $0xc] sm:$0xff] }
 0x45a   :  { %1145 = vmatpush.msrb.mxu2 %v1094_v46 }
 0x45f   :  { %975 = vperm.xlu0 %1552, %v824_v58  }
 0x467   :  { %984 = vperm.xlu0 %1552, %v869_v7  }
 0x485   :  { %v910_v24 = vpop.permute.xlu2 %909 }
 0x486   :  { %v922_v60 = vperm.slane %v910_v24, %v1803_v29 }
 0x499   :  { %v895_v47 = vpop.permute.xlu0 %894 }
 0x49a   :  { %v917_v30 = vperm.slane %v895_v47, %v1803_v29 }
 0x49e   :  { %v913_v52 = vpop.permute.xlu1 %912 }
 0x49f   :  { %v923_v23 = vperm.slane %v913_v52, %v1803_v29 }
 0x4a1   :  { %v898_v50 = vpop.permute.xlu0 %897 }
 0x4a2   :  { %v918_v19 = vperm.slane %v898_v50, %v1803_v29  ;;  %v970_v36 = vpop.permute.xlu2 %969 }
 0x4a3   :  { %v990_v6 = vperm.slane %v970_v36, %v1803_v29 }
 0x4a4   :  { %v925_v27 = vsel %vm397_vm11, %v918_v19, %v917_v30 }
 0x4a9   :  { %v901_v49 = vpop.permute.xlu0 %900 }
 0x4aa   :  { %v919_v11 = vperm.slane %v901_v49, %v1803_v29  ;;  %v979_v33 = vpop.permute.xlu2 %978 }
 0x4ab   :  { %v993_v25 = vperm.slane %v979_v33, %v1803_v29 }
 0x4ac   :  { %v926_v20 = vsel %vm399_vm12, %v919_v11, %v925_v27 }
 0x4b1   :  { %v904_v16 = vpop.permute.xlu0 %903 }
 0x4b2   :  { %v920_v55 = vperm.slane %v904_v16, %v1803_v29  ;;  %v988_v44 = vpop.permute.xlu2 %987 }
 0x4b3   :  { %v996_v26 = vperm.slane %v988_v44, %v1803_v29 }
 0x4b4   :  { %v927_v56 = vsel %vm401_vm14, %v920_v55, %v926_v20 }
 0x4b9   :  { %v907_v18 = vpop.permute.xlu0 %906 }
 0x4ba   :  { %v921_v31 = vperm.slane %v907_v18, %v1803_v29 }
 0x4bb   :  { %v973_v39 = vpop.permute.xlu1 %972 }
 0x4bc   :  { %v928_v21 = vsel %vm403_vm15, %v921_v31, %v927_v56  ;;  %v991_v41 = vperm.slane %v973_v39, %v1803_v29 }
 0x4bd   :  { %v929_v53 = vsel %vm2398_vm5, %v922_v60, %v928_v21 }
 0x4be   :  { %v930_v22 = vsel %vm2399_vm8, %v923_v23, %v929_v53  ;;  %vm1121_vm8 = vcmask 80896   ;;  %v1556_v53 = vld [vmem:[%s2369_s1 + $0x16] ss:$0 sm:$0xff] }
 0x4c1   :  { %v916_v32 = vpop.permute.xlu0 %915 }
 0x4c2   :  { %v924_v61 = vperm.slane %v916_v32, %v1803_v29 }
 0x4c3   :  { %v982_v28 = vpop.permute.xlu1 %981 }
 0x4c4   :  { %v931_v48 = vsel %vm2400_vm7, %v924_v61, %v930_v22  ;;  %v994_v57 = vperm.slane %v982_v28, %v1803_v29  ;;  %vm1157_vm7 = vcmask 654336  }
 0x4c5   :  { %1522 = vmatmul.msk.f32.vlgmr.msra.gmra.mxu3 %vm2401_vm6, %v931_v48  ;;  %vm1159_vm6 = vcmask 652288  }
 0x4c9   :  { %v967_v0 = vpop.permute.xlu0 %966 }
 0x4ca   :  { %v989_v38 = vperm.slane %v967_v0, %v1803_v29 }
 0x4cb   :  { %v1005_v62 = vpop.permute.xlu1 %1004 }
 0x4cc   :  { %1024 = vmatpush.msrb.mxu3 %v1005_v62  ;;  %v997_v40 = vsel %vm397_vm11, %v990_v6, %v989_v38 }
 0x4cd   :  { %v998_v1 = vsel %vm399_vm12, %v991_v41, %v997_v40 }
 0x4ce   :  { %1532 = vmatpush.msk.msra.mxu3 %vm34_vm0, %v1031_v5  ;;  %vm2402_vm0 = vmmov %vm2398_vm5  ;;  %v1656_v5 = vmov 14.0  }
 0x4cf   :  { %1622 = vrcp.f32 %v1656_v5 }
 0x4d1   :  { %v976_v15 = vpop.permute.xlu0 %975 }
 0x4d2   :  { %v992_v10 = vperm.slane %v976_v15, %v1803_v29 }
 0x4d4   :  { %v999_v54 = vsel %vm401_vm14, %v992_v10, %v998_v1  ;;  %vm2406_vm14 = vcmp.eq.f32.partialorder %v1712_v35, 0.0 }
 0x4d5   :  { %v1000_v4 = vsel %vm403_vm15, %v993_v25, %v999_v54  ;;  %vm2407_vm15 = vcmask 39936   ;;  %v1623_v32 = vpop.eup %1622 }
 0x4d6   :  { %v1001_v14 = vsel %vm2402_vm0, %v994_v57, %v1000_v4  ;;  %vm2409_vm13 = vmmov %vm2407_vm15  ;;  %v1169_v36 = vmul.f32 14.0, %v1623_v32  ;;  %vm1173_vm0 = vweird.f32 %v1623_v32 }
 0x4d7   :  { %vm2410_vm3 = vmmov %vm2409_vm13 }
 0x4d8   :  { %vm2411_vm5 = vmmov %vm2410_vm3  ;;  %v1170_v38 = vsub.f32 1.0, %v1169_v36 }
 0x4d9   :  { %v985_v43 = vpop.permute.xlu0 %984 }
 0x4da   :  { %v995_v45 = vperm.slane %v985_v43, %v1803_v29  ;;  %v1555_v29 = vld [vmem:[%s2369_s1 + $0xb] ss:$0 sm:$0xff]  ;;  %v1171_v40 = vmul.f32 %v1623_v32, %v1170_v38 }
 0x4dc   :  { %v1002_v59 = vsel %vm2403_vm10, %v995_v45, %v1001_v14  ;;  %v1172_v10 = vadd.f32 %v1623_v32, %v1171_v40  ;;  %vm1207_vm10 = vcmask 130048  }
 0x4dd   :  { %v1003_v17 = vsel %vm2404_vm9, %v996_v26, %v1002_v59  ;;  %vm1209_vm9 = vcmask 261120  }
 0x4de   :  { %1523 = vmatmul.msk.f32.vlgmr.msrb.gmra.mxu3 %vm2405_vm2, %v1003_v17  ;;  %v1174_v25 = vsel %vm1173_vm0, %v1623_v32, %v1172_v10  ;;  %vm1211_vm2 = vcmask 392192  }
 0x548   :  { %v954_v51 = vpop.f32.mrf.mxu3 }
 0x549   :  { %v1029_v8 = vsel %vm2406_vm14, 0.0, %v954_v51  ;;  %vm1213_vm14 = vcmask 523264  }
 0x54a   :  { %1525 = vmatmul.msk.f32.vlgmr.msrb.gmra.mxu1 %vm2407_vm15, %v1029_v8 }
 0x561   :  { %v1026_v63 = vpop.f32.mrf.mxu3 }
 0x562   :  { %v1030_v2 = vsel %vm2408_vm4, 0.0, %v1026_v63 }
 0x563   :  { %1526 = vmatmul.msk.f32.vlgmr.msra.gmra.mxu3 %vm2409_vm13, %v1030_v2 }
 0x5c7   :  { %v1060_v3 = vpop.f32.mrf.mxu1 }
 0x5c8   :  { %v1061_v12 = vadd.f32 %v1555_v29, %v1060_v3 }
 0x5ca   :  { %v1066_v34 = vmax.f32 %v1061_v12, 0.0 }
 0x5cc   :  { %v1070_v58 = vrot.slane %v1066_v34, 1 }
 0x5ce   :  { %1072 = vrot.lane.b32.xlu0 %v1070_v58, %s1655_s22 }
 0x5e6   :  { %v1063_v35 = vpop.f32.mrf.mxu3 }
 0x5e7   :  { %v1064_v42 = vadd.f32 %v1555_v29, %v1063_v35 }
 0x5e9   :  { %v1067_v9 = vmax.f32 %v1064_v42, 0.0 }
 0x5eb   :  { %v1071_v13 = vrot.slane %v1067_v9, 1 }
 0x5ed   :  { %1074 = vrot.lane.b32.xlu2 %v1071_v13, %s1655_s22 }
 0x640   :  { %v1073_v7 = vpop.permute.xlu0 %1072 }
 0x641   :  { %v1078_v47 = vsel %vm2410_vm3, %v1066_v34, %v1073_v7  ;;  %vm1443_vm3 = vcmask 1047556  }
 0x642   :  { %v1082_v50 = vrot.slane %v1078_v47, 1  ;;  %v1083_v49 = vrot.slane %v1078_v47, 2  ;;  %v1084_v16 = vrot.slane %v1078_v47, 3  ;;  %1098 = vst [vmem:[#allocation1] ss:$9 sm:$0xff] %v1078_v47  ;;  %v1085_v52 = vrot.slane %v1078_v47, 4 }
 0x643   :  { %v1086_v19 = vrot.slane %v1078_v47, 5  ;;  %v1087_v11 = vrot.slane %v1078_v47, 6 }
 0x644   :  { %1100 = vst [vmem:[#allocation1 + $0x1] ss:$9 sm:$0xff] %v1082_v50 }
 0x645   :  { %1102 = vst [vmem:[#allocation1 + $0x2] ss:$9 sm:$0xff] %v1083_v49 }
 0x646   :  { %1104 = vst [vmem:[#allocation1 + $0x3] ss:$9 sm:$0xff] %v1084_v16 }
 0x647   :  { %1106 = vst [vmem:[#allocation1 + $0x4] ss:$9 sm:$0xff] %v1085_v52  ;;  %v1075_v30 = vpop.permute.xlu2 %1074 }
 0x648   :  { %1108 = vst [vmem:[#allocation1 + $0x5] ss:$9 sm:$0xff] %v1086_v19  ;;  %v1079_v55 = vsel %vm2411_vm5, %v1067_v9, %v1075_v30 }
 0x649   :  { %1110 = vst [vmem:[#allocation1 + $0x6] ss:$9 sm:$0xff] %v1087_v11  ;;  %v1088_v18 = vrot.slane %v1079_v55, 1  ;;  %v1089_v27 = vrot.slane %v1079_v55, 2  ;;  %v1090_v24 = vrot.slane %v1079_v55, 3  ;;  %v1091_v20 = vrot.slane %v1079_v55, 4 }
 0x64a   :  { %1112 = vst [vmem:[#allocation1 + $0x7] ss:$9 sm:$0xff] %v1079_v55  ;;  %v1092_v39 = vrot.slane %v1079_v55, 5  ;;  %v1093_v56 = vrot.slane %v1079_v55, 6 }
 0x651   :  { %v1113_v31 = vld [vmem:[#allocation1] sm:$0xff] }
 0x652   :  { %1114 = vst [vmem:[#allocation1] ss:$9 sm:$0xff] %v1088_v18  ;;  %1528 = vmatmul.msk.f32.vlgmr.msrb.gmra.mxu2 %vm1121_vm8, %v1113_v31 }
 0x653   :  { %1115 = vst [vmem:[#allocation1 + $0x1] ss:$9 sm:$0xff] %v1089_v27  ;;  %v1156_v27 = vld [vmem:[%s2369_s1 + $0x18] sm:$0x1] }
 0x654   :  { %1116 = vst [vmem:[#allocation1 + $0x2] ss:$9 sm:$0xff] %v1090_v24 }
 0x655   :  { %1117 = vst [vmem:[#allocation1 + $0x3] ss:$9 sm:$0xff] %v1091_v20 }
 0x656   :  { %1118 = vst [vmem:[#allocation1 + $0x4] ss:$9 sm:$0xff] %v1092_v39 }
 0x657   :  { %1119 = vst [vmem:[#allocation1 + $0x5] ss:$9 sm:$0xff] %v1093_v56 }
 0x65e   :  { %v1120_v21 = vld [vmem:[#allocation1] sm:$0xff] }
 0x65f   :  { %1529 = vmatmul.msk.f32.gmra.mxu2 %vm1121_vm8, %v1120_v21 }
 0x6d5   :  { %v1147_v60 = vpop.f32.mrf.mxu2 }
 0x6d6   :  { %v1148_v23 = vadd.f32 %v1556_v53, %v1147_v60 }
 0x6d8   :  { %v1153_v28 = vmax.f32 %v1148_v23, 0.0 }
 0x6da   :  { %v1158_v0 = vsel %vm1157_vm7, %v1153_v28, 0.0 }
 0x6e2   :  { %v1150_v61 = vpop.f32.mrf.mxu2 }
 0x6e3   :  { %v1151_v22 = vadd.f32 %v1556_v53, %v1150_v61 }
 0x6e5   :  { %v1154_v48 = vmax.f32 %v1151_v22, 0.0 }
 0x6e7   :  { %v1160_v62 = vsel %vm1159_vm6, %v1154_v48, 0.0 }
 0x6e8   :  { %v1161_v33 = vadd.f32 %v1160_v62, %v1158_v0 }
 0x6ea   :  { %v1162_v6 = vrot.slane %v1161_v33, 4 }
 0x6ec   :  { %v1163_v15 = vadd.f32 %v1162_v6, %v1161_v33 }
 0x6ee   :  { %v1164_v41 = vrot.slane %v1163_v15, 2 }
 0x6f0   :  { %v1165_v1 = vadd.f32 %v1164_v41, %v1163_v15 }
 0x6f2   :  { %v1166_v54 = vrot.slane %v1165_v1, 1 }
 0x6f4   :  { %v1167_v44 = vadd.f32 %v1166_v54, %v1165_v1 }
 0x6f6   :  { %v1175_v4 = vmul.f32 %v1174_v25, %v1167_v44 }
 0x6f8   :  { %1185 = vrot.lane.b32.xlu2 %v1175_v4, %s1657_s29  ;;  %1181 = vrot.lane.b32.xlu0 %v1175_v4, %s1658_s30 }
 0x6f9   :  { %1177 = vrot.lane.b32.xlu1 %v1175_v4, %s1659_s3 }
 0x701   :  { %1189 = vrot.lane.b32.xlu1 %v1175_v4, %s1660_s4 }
 0x752   :  { %v1186_v14 = vpop.permute.xlu2 %1185 }
 0x76a   :  { %v1182_v45 = vpop.permute.xlu0 %1181 }
 0x76b   :  { %v1178_v57 = vpop.permute.xlu1 %1177 }
 0x76c   :  { %v1180_v43 = vadd.f32 %v1178_v57, %v1175_v4 }
 0x76e   :  { %v1184_v26 = vadd.f32 %v1182_v45, %v1180_v43 }
 0x770   :  { %v1188_v59 = vadd.f32 %v1186_v14, %v1184_v26 }
 0x773   :  { %v1190_v17 = vpop.permute.xlu1 %1189 }
 0x774   :  { %v1192_v51 = vadd.f32 %v1190_v17, %v1188_v59 }
 0x776   :  { %v1193_v8 = vmul.f32 0.2, %v1192_v51 }
 0x778   :  { %1201 = vrot.lane.b32.xlu1 %v1193_v8, %s1661_s5  ;;  %1198 = vrot.lane.b32.xlu2 %v1193_v8, %s1662_s6 }
 0x779   :  { %1195 = vrot.lane.b32.xlu0 %v1193_v8, %s1663_s7 }
 0x781   :  { %1204 = vrot.lane.b32.xlu0 %v1193_v8, %s1660_s4 }
 0x7d2   :  { %v1199_v29 = vpop.permute.xlu2 %1198 }
 0x7ea   :  { %v1202_v12 = vpop.permute.xlu1 %1201 }
 0x7eb   :  { %v1196_v63 = vpop.permute.xlu0 %1195 }
 0x7ec   :  { %v1208_v2 = vsel %vm1207_vm10, %v1193_v8, %v1196_v63 }
 0x7ed   :  { %v1210_v3 = vsel %vm1209_vm9, %v1208_v2, %v1199_v29 }
 0x7ee   :  { %v1212_v34 = vsel %vm1211_vm2, %v1210_v3, %v1202_v12 }
 0x7f3   :  { %v1205_v58 = vpop.permute.xlu0 %1204 }
 0x7f4   :  { %v1214_v35 = vsel %vm1213_vm14, %v1212_v34, %v1205_v58 }
 0x7f5   :  { %v1215_v42 = vperm.slane %v1214_v35, 0 }
 0x7f7   :  { %v2293_v9 = vsub.f32 %v1153_v28, %v1215_v42  ;;  %v2295_v13 = vsub.f32 %v1154_v48, %v1215_v42  ;;  %v1155_v48 = vld [vmem:[%s2369_s1 + $0x17] sm:$0x1] }
 0x7f9   :  { %v1218_v37 = vmul.f32 %v2293_v9, %v2293_v9  ;;  %v1219_v46 = vmul.f32 %v2295_v13, %v2295_v13 }
 0x7fb   :  { %v1220_v7 = vsel %vm1157_vm7, %v1218_v37, 0.0  ;;  %v1221_v47 = vsel %vm1159_vm6, %v1219_v46, 0.0 }
 0x7fc   :  { %v1222_v50 = vadd.f32 %v1221_v47, %v1220_v7 }
 0x7fe   :  { %v1223_v49 = vrot.slane %v1222_v50, 4 }
 0x800   :  { %v1224_v16 = vadd.f32 %v1223_v49, %v1222_v50 }
 0x802   :  { %v1225_v52 = vrot.slane %v1224_v16, 2 }
 0x804   :  { %v1226_v19 = vadd.f32 %v1225_v52, %v1224_v16 }
 0x806   :  { %v1227_v11 = vrot.slane %v1226_v19, 1 }
 0x808   :  { %v1228_v30 = vadd.f32 %v1227_v11, %v1226_v19 }
 0x80a   :  { %v1229_v55 = vmul.f32 %v1228_v30, %v1174_v25 }
 0x80c   :  { %1239 = vrot.lane.b32.xlu0 %v1229_v55, %s1657_s29  ;;  %1235 = vrot.lane.b32.xlu1 %v1229_v55, %s1658_s30 }
 0x80d   :  { %1231 = vrot.lane.b32.xlu2 %v1229_v55, %s1659_s3 }
 0x814   :  { %1281 = vrot.lane.b32.xlu1 %v1156_v27, %s1663_s7 }
 0x815   :  { %1243 = vrot.lane.b32.xlu2 %v1229_v55, %s1660_s4 }
 0x867   :  { %v1232_v18 = vpop.permute.xlu2 %1231 }
 0x868   :  { %v1234_v31 = vadd.f32 %v1232_v18, %v1229_v55 }
 0x86f   :  { %v1244_v21 = vpop.permute.xlu2 %1243 }
 0x87e   :  { %v1236_v24 = vpop.permute.xlu1 %1235  ;;  %v1240_v39 = vpop.permute.xlu0 %1239 }
 0x87f   :  { %v1238_v20 = vadd.f32 %v1236_v24, %v1234_v31 }
 0x881   :  { %v1242_v56 = vadd.f32 %v1240_v39, %v1238_v20 }
 0x883   :  { %v1246_v60 = vadd.f32 %v1244_v21, %v1242_v56 }
 0x885   :  { %v1247_v5 = vmul.f32 0.2, %v1246_v60 }
 0x886   :  { %v1282_v38 = vpop.permute.xlu1 %1281 }
 0x887   :  { %v1248_v53 = vadd.f32 1e-05, %v1247_v5  ;;  %v1293_v25 = vsel %vm1207_vm10, %v1156_v27, %v1282_v38 }
 0x889   :  { %1624 = vrsqrt.f32 %v1248_v53  ;;  %vm1255_vm4 = vweird.f32 %v1248_v53 }
 0x88f   :  { %v1625_v23 = vpop.eup %1624 }
 0x890   :  { %v1250_v32 = vmul.f32 %v1625_v23, %v1248_v53  ;;  %vm1256_vm15 = vweird.f32 %v1625_v23 }
 0x891   :  { %vm1257_vm13 = vmor %vm1255_vm4, %vm1256_vm15 }
 0x892   :  { %v1251_v61 = vmul.f32 %v1625_v23, %v1250_v32 }
 0x894   :  { %v1252_v28 = vmul.f32 0.5, %v1251_v61 }
 0x896   :  { %v1253_v22 = vsub.f32 1.5, %v1252_v28 }
 0x898   :  { %v1254_v36 = vmul.f32 %v1625_v23, %v1253_v22 }
 0x89a   :  { %v1258_v0 = vsel %vm1257_vm13, %v1625_v23, %v1254_v36 }
 0x89b   :  { %v1259_v62 = vmul.f32 %v1258_v0, %v1155_v48 }
 0x89d   :  { %1267 = vrot.lane.b32.xlu2 %v1259_v62, %s1661_s5  ;;  %1264 = vrot.lane.b32.xlu0 %v1259_v62, %s1662_s6 }
 0x89e   :  { %1261 = vrot.lane.b32.xlu1 %v1259_v62, %s1663_s7 }
 0x8a5   :  { %1270 = vrot.lane.b32.xlu0 %v1259_v62, %s1660_s4  ;;  %1284 = vrot.lane.b32.xlu2 %v1156_v27, %s1662_s6 }
 0x8a6   :  { %1287 = vrot.lane.b32.xlu1 %v1156_v27, %s1661_s5 }
 0x8ad   :  { %1290 = vrot.lane.b32.xlu0 %v1156_v27, %s1660_s4 }
 0x8f7   :  { %v1268_v40 = vpop.permute.xlu2 %1267 }
 0x8ff   :  { %v1285_v44 = vpop.permute.xlu2 %1284 }
 0x900   :  { %v1294_v43 = vsel %vm1209_vm9, %v1293_v25, %v1285_v44 }
 0x90f   :  { %v1265_v33 = vpop.permute.xlu0 %1264 }
 0x910   :  { %v1262_v6 = vpop.permute.xlu1 %1261 }
 0x911   :  { %v1273_v15 = vsel %vm1207_vm10, %v1259_v62, %v1262_v6 }
 0x912   :  { %v1274_v41 = vsel %vm1209_vm9, %v1273_v15, %v1265_v33 }
 0x913   :  { %v1275_v1 = vsel %vm1211_vm2, %v1274_v41, %v1268_v40 }
 0x917   :  { %v1271_v10 = vpop.permute.xlu0 %1270 }
 0x918   :  { %v1276_v54 = vsel %vm1213_vm14, %v1275_v1, %v1271_v10  ;;  %v1288_v4 = vpop.permute.xlu1 %1287 }
 0x919   :  { %v1277_v57 = vperm.slane %v1276_v54, 0  ;;  %v1295_v45 = vsel %vm1211_vm2, %v1294_v43, %v1288_v4 }
 0x91b   :  { %v1278_v59 = vmul.f32 %v1277_v57, %v2293_v9  ;;  %v1279_v47 = vmul.f32 %v1277_v57, %v2295_v13 }
 0x91f   :  { %v1291_v26 = vpop.permute.xlu0 %1290 }
 0x920   :  { %v1296_v14 = vsel %vm1213_vm14, %v1295_v45, %v1291_v26 }
 0x921   :  { %v1297_v17 = vperm.slane %v1296_v14, 0 }
 0x923   :  { %v1298_v51 = vadd.f32 %v1297_v17, %v1278_v59  ;;  %v1299_v52 = vadd.f32 %v1297_v17, %v1279_v47 }
 0x925   :  { %v1302_v8 = vrot.slane %v1298_v51, 1  ;;  %1312 = vst [vmem:[#allocation1] ss:$9 sm:$0xff] %v1298_v51  ;;  %v1303_v63 = vrot.slane %v1298_v51, 2  ;;  %v1304_v2 = vrot.slane %v1298_v51, 3  ;;  %v1305_v12 = vrot.slane %v1298_v51, 4 }
 0x926   :  { %v1306_v34 = vrot.slane %v1298_v51, 5  ;;  %v1307_v50 = vrot.slane %v1298_v51, 7  ;;  %v1308_v27 = vrot.slane %v1299_v52, 1  ;;  %v1309_v31 = vrot.slane %v1299_v52, 2 }
 0x927   :  { %1314 = vst [vmem:[#allocation1 + $0x1] ss:$9 sm:$0xff] %v1302_v8  ;;  %v1310_v39 = vrot.slane %v1299_v52, 3  ;;  %v1311_v56 = vrot.slane %v1299_v52, 4 }
 0x92e   :  { %v1315_v29 = vld [vmem:[#allocation1] sm:$0xff] }
 0x92f   :  { %1316 = vst [vmem:[#allocation1] ss:$9 sm:$0xff] %v1303_v63  ;;  %v1338_v3 = vsel %vm1337_vm1, %v1315_v29, -inf }
 0x930   :  { %1317 = vst [vmem:[#allocation1 + $0x1] ss:$9 sm:$0xff] %v1304_v2  ;;  %v1339_v35 = vrot.slane %v1338_v3, 4 }
 0x932   :  { %v1340_v46 = vmax.f32 %v1338_v3, %v1339_v35 }
 0x934   :  { %v1341_v16 = vrot.slane %v1340_v46, 2 }
 0x936   :  { %v1342_v55 = vmax.f32 %v1340_v46, %v1341_v16 }
 0x937   :  { %v1318_v58 = vld [vmem:[#allocation1] sm:$0xff] }
 0x938   :  { %1319 = vst [vmem:[#allocation1] ss:$9 sm:$0xff] %v1305_v12  ;;  %v1345_v42 = vsel %vm1337_vm1, %v1318_v58, -inf  ;;  %v1343_v18 = vrot.slane %v1342_v55, 1 }
 0x939   :  { %1320 = vst [vmem:[#allocation1 + $0x1] ss:$9 sm:$0xff] %v1306_v34  ;;  %v1346_v9 = vrot.slane %v1345_v42, 4 }
 0x93a   :  { %v1344_v13 = vmax.f32 %v1342_v55, %v1343_v18 }
 0x93b   :  { %v1347_v37 = vmax.f32 %v1345_v42, %v1346_v9 }
 0x93d   :  { %v1348_v7 = vrot.slane %v1347_v37, 2 }
 0x93f   :  { %v1349_v49 = vmax.f32 %v1347_v37, %v1348_v7 }
 0x940   :  { %v1321_v19 = vld [vmem:[#allocation1] sm:$0xff] }
 0x941   :  { %1322 = vst [vmem:[#allocation1] ss:$9 sm:$0xff] %v1307_v50  ;;  %v1350_v11 = vrot.slane %v1349_v49, 1  ;;  %v1352_v28 = vsel %vm1337_vm1, %v1321_v19, -inf }
 0x942   :  { %1323 = vst [vmem:[#allocation1 + $0x1] ss:$9 sm:$0xff] %v1299_v52  ;;  %v1353_v0 = vrot.slane %v1352_v28, 4 }
 0x943   :  { %v2333_v30 = vmax.f32 %v1349_v49, %v1350_v11  ;;  %v1664_v49 = vmov 1983009808  }
 0x944   :  { %v1354_v41 = vmax.f32 %v1352_v28, %v1353_v0  ;;  %v1434_v16 = vunpack.c.l.s4 %v1664_v49 }
 0x945   :  { %1388 = vrot.lane.b32.xlu0 %v2333_v30, %s1659_s3 }
 0x946   :  { %v1355_v25 = vrot.slane %v1354_v41, 2  ;;  %v1435_v19 = vunpack.c.0.s8 %v1434_v16 }
 0x948   :  { %v1356_v43 = vmax.f32 %v1354_v41, %v1355_v25 }
 0x949   :  { %v1324_v24 = vld [vmem:[#allocation1] sm:$0xff] }
 0x94a   :  { %1325 = vst [vmem:[#allocation1] ss:$9 sm:$0xff] %v1308_v27  ;;  %v1359_v20 = vsel %vm1337_vm1, %v1324_v24, -inf  ;;  %v1357_v45 = vrot.slane %v1356_v43, 1 }
 0x94b   :  { %1326 = vst [vmem:[#allocation1 + $0x1] ss:$9 sm:$0xff] %v1309_v31  ;;  %v1360_v60 = vrot.slane %v1359_v20, 4 }
 0x94c   :  { %v1358_v26 = vmax.f32 %v1356_v43, %v1357_v45 }
 0x94d   :  { %1386 = vrot.lane.b32.xlu0 %v1344_v13, %s1659_s3  ;;  %v1361_v32 = vmax.f32 %v1359_v20, %v1360_v60 }
 0x94f   :  { %v1362_v36 = vrot.slane %v1361_v32, 2 }
 0x951   :  { %v1363_v40 = vmax.f32 %v1361_v32, %v1362_v36  ;;  %v1467_v32 = vld [vmem:[%s2369_s1 + $0x19] sm:$0x3] }
 0x952   :  { %v1327_v21 = vld [vmem:[#allocation1] sm:$0xff] }
 0x953   :  { %v1366_v5 = vsel %vm1337_vm1, %v1327_v21, -inf  ;;  %1328 = vst [vmem:[#allocation1] ss:$9 sm:$0xff] %v1310_v39  ;;  %v1364_v1 = vrot.slane %v1363_v40, 1 }
 0x954   :  { %v1367_v53 = vrot.slane %v1366_v5, 4  ;;  %1329 = vst [vmem:[#allocation1 + $0x1] ss:$9 sm:$0xff] %v1311_v56 }
 0x955   :  { %v1365_v4 = vmax.f32 %v1363_v40, %v1364_v1 }
 0x956   :  { %v1368_v23 = vmax.f32 %v1366_v5, %v1367_v53 }
 0x958   :  { %v1369_v61 = vrot.slane %v1368_v23, 2 }
 0x95a   :  { %v1370_v22 = vmax.f32 %v1368_v23, %v1369_v61 }
 0x95b   :  { %v1330_v48 = vld [vmem:[#allocation1] sm:$0xff] }
 0x95c   :  { %v1371_v62 = vrot.slane %v1370_v22, 1  ;;  %v1373_v38 = vsel %vm1337_vm1, %v1330_v48, -inf  ;;  %v1557_v48 = vld [vmem:[%s2369_s1 + $0x1b] ss:$0 sm:$0xff] }
 0x95d   :  { %v1374_v33 = vrot.slane %v1373_v38, 4 }
 0x95e   :  { %v1372_v6 = vmax.f32 %v1370_v22, %v1371_v62 }
 0x95f   :  { %v1375_v15 = vmax.f32 %v1373_v38, %v1374_v33 }
 0x960   :  { %1394 = vrot.lane.b32.xlu2 %v1372_v6, %s1659_s3 }
 0x961   :  { %v1376_v10 = vrot.slane %v1375_v15, 2 }
 0x963   :  { %v1377_v54 = vmax.f32 %v1375_v15, %v1376_v10 }
 0x965   :  { %v1378_v44 = vrot.slane %v1377_v54, 1 }
 0x967   :  { %v1379_v57 = vmax.f32 %v1377_v54, %v1378_v44 }
 0x968   :  { %1392 = vrot.lane.b32.xlu2 %v1365_v4, %s1659_s3 }
 0x969   :  { %1396 = vrot.lane.b32.xlu1 %v1379_v57, %s1659_s3 }
 0x971   :  { %1390 = vrot.lane.b32.xlu1 %v1358_v26, %s1659_s3 }
 0x9b7   :  { %v1389_v59 = vpop.permute.xlu0 %1388 }
 0x9b8   :  { %v1405_v35 = vmax.f32 %v2333_v30, %v1389_v59  ;;  %v1665_v30 = vmov 1934713408  }
 0x9b9   :  { %v1448_v55 = vunpack.c.l.s4 %v1665_v30 }
 0x9ba   :  { %v1395_v14 = vpop.permute.xlu2 %1394  ;;  %v1416_v46 = vrot.slane %v1405_v35, 7 }
 0x9bb   :  { %v1408_v51 = vmax.f32 %v1372_v6, %v1395_v14  ;;  %v1449_v24 = vunpack.c.0.s8 %v1448_v55 }
 0x9bd   :  { %v1420_v29 = vrot.slane %v1408_v51, 7 }
 0x9bf   :  { %v1387_v34 = vpop.permute.xlu0 %1386 }
 0x9c0   :  { %v1404_v42 = vmax.f32 %v1344_v13, %v1387_v34 }
 0x9c2   :  { %v1393_v17 = vpop.permute.xlu2 %1392  ;;  %v1417_v47 = vsel %vm397_vm11, %v1416_v46, %v1404_v42 }
 0x9c3   :  { %v1407_v8 = vmax.f32 %v1365_v4, %v1393_v17 }
 0x9c5   :  { %v1421_v12 = vsel %vm397_vm11, %v1420_v29, %v1407_v8  ;;  %vm1470_vm11 = vcmask 785408  }
 0x9c6   :  { %1530 = vmatpush.xpose.msk.msrb.mxu0 %vm1470_vm11, %v1467_v32 }
 0x9db   :  { %v1397_v63 = vpop.permute.xlu1 %1396 }
 0x9dc   :  { %v1409_v2 = vmax.f32 %v1379_v57, %v1397_v63 }
 0x9de   :  { %v1422_v3 = vrot.slane %v1409_v2, 6 }
 0x9e0   :  { %v1423_v58 = vsel %vm399_vm12, %v1422_v3, %v1421_v12 }
 0x9e1   :  { %1428 = vrot.lane.b32.xlu2 %v1423_v58, %s1659_s3 }
 0x9e3   :  { %v1391_v9 = vpop.permute.xlu1 %1390 }
 0x9e4   :  { %v1406_v37 = vmax.f32 %v1358_v26, %v1391_v9 }
 0x9e6   :  { %v1418_v7 = vrot.slane %v1406_v37, 6 }
 0x9e8   :  { %v1419_v50 = vsel %vm399_vm12, %v1418_v7, %v1417_v47  ;;  %vm1497_vm12 = vcmask 9216  }
 0x9e9   :  { %1426 = vrot.lane.b32.xlu1 %v1419_v50, %s1659_s3 }
 0xa3b   :  { %v1429_v52 = vpop.permute.xlu2 %1428 }
 0xa3c   :  { %v1437_v11 = vsel %vm1207_vm10, %v1423_v58, %v1429_v52 }
 0xa3d   :  { %v1441_v18 = vperm.slane %v1437_v11, %v1435_v19 }
 0xa3f   :  { %v1442_v13 = vrot.slane %v1441_v18, 4 }
 0xa5b   :  { %v1427_v27 = vpop.permute.xlu1 %1426 }
 0xa5c   :  { %v1432_v31 = vsel %vm1207_vm10, %v1419_v50, %v1427_v27 }
 0xa5d   :  { %v1436_v20 = vperm.slane %v1432_v31, %v1435_v19 }
 0xa5f   :  { %v1445_v39 = vrot.slane %v1436_v20, 4  ;;  %v1444_v56 = vsel %vm1443_vm3, %v1442_v13, %v1436_v20 }
 0xa60   :  { %v1450_v21 = vperm.slane %v1444_v56, %v1449_v24 }
 0xa61   :  { %v1446_v60 = vsel %vm1443_vm3, %v1441_v18, %v1445_v39 }
 0xa62   :  { %v1456_v5 = vperm.slane %v1446_v60, %v1449_v24  ;;  %v1451_v53 = vrot.slane %v1450_v21, 4 }
 0xa64   :  { %1462 = vrot.lane.b32.xlu2 %v1456_v5, %s1660_s4  ;;  %v1452_v23 = vsel %vm1443_vm3, 0.0, %v1451_v53 }
 0xa65   :  { %1458 = vrot.lane.b32.xlu0 %v1452_v23, %s1662_s6 }
 0xabe   :  { %v1463_v28 = vpop.permute.xlu2 %1462 }
 0xad7   :  { %v1459_v61 = vpop.permute.xlu0 %1458 }
 0xad8   :  { %v1465_v22 = vsel %vm1209_vm9, %v1450_v21, %v1459_v61 }
 0xad9   :  { %v1466_v36 = vsel %vm1213_vm14, %v1465_v22, %v1463_v28 }
 0xada   :  { %1531 = vmatmul.msk.f32.vlgmr.msrb.gmra.mxu0 %vm1470_vm11, %v1466_v36 }
 0xb57   :  { %v1494_v0 = vpop.f32.mrf.mxu0 }
 0xb58   :  { %v1495_v62 = vadd.f32 %v1557_v48, %v1494_v0 }
 0xb5a   :  { %1498 = vst.msk [vmem:[#allocation2] sm:$0x3] %vm1497_vm12, %v1495_v62 }
 0xb5b   :  { %1509 = dma.vmem_to_hbm [thread:$0]  %s1505_s17, 32, %s1507_s19, [#allocation3]  }
 0xb5c   :  { %1650 = dma.done.wait [#allocation3], 32  }
 0xb5d   :  { %1651 = vsyncadd [#allocation3], 4294967264 }
 0xb5e   :  { %1514 = vsyncpa [#allocation3], 1 }

</bundles_post_ra>
